<compile_context>
chip_gen: v5e
topology: v5e:2x2
jax: 0.10.0
libtpu: 0.0.40
codegen_flags: <defaults>
</compile_context>

<pallas_src>
import functools

import jax
import jax.numpy as jnp
from jax.experimental import pallas as pl
from jax.experimental.pallas import tpu as pltpu


# ----------------------------- fused kernel ---------------------------------


def _bottleneck_kernel(x_ref, xh_ref, w1_ref, s1_ref, b1_ref,
                       w2_ref, s2_ref, b2_ref,
                       w3_ref, s3_ref, b3_ref,
                       o_ref, *, tile_h, W):
    """One (batch, row-tile) step.

    x_ref  : (tile_h*W, Cin_p)  f32  interior rows of x (conv1 input + residual)
    xh_ref : (2*W,      Cin_p)  f32  replication-clamped halo rows
                                     (row above the tile, row below the tile)
    o_ref  : (tile_h*W, Cout_p) f32
    """
    R = tile_h * W
    Cmid = w1_ref.shape[1]
    f32, bf16 = jnp.float32, jnp.bfloat16

    # Read x once: conv1 input and (f32, exact) residual.
    x = x_ref[...]                                          # (R, Cin_p)

    w1 = w1_ref[...]
    s1 = s1_ref[...]
    b1 = b1_ref[...]

    # ---- conv1 (1x1) + bn1 + relu, for interior rows and the 2 halo rows ----
    def conv1(inp):
        h = jnp.dot(inp.astype(bf16), w1, preferred_element_type=f32)
        return jnp.maximum(h * s1 + b1, 0.0)

    h1 = conv1(x)                                           # (R,  Cmid) f32
    hh = conv1(xh_ref[...])                                 # (2W, Cmid) f32

    # ---- ReplicationPad2d(1) + conv2 (3x3) folded into ONE big-K matmul -----
    # Row direction (ky): the halo rows already encode the clamped neighbours,
    # so the row-shifted images are plain sublane concats (no masks needed;
    # image top/bottom replication was baked into the halo by the wrapper).
    h_up = jnp.concatenate([hh[:W], h1[: R - W]], axis=0)   # h1[clamp(h-1), w]
    h_dn = jnp.concatenate([h1[W:], hh[W:]], axis=0)        # h1[clamp(h+1), w]

    # Lane-concat the three ky variants so each column shift is ONE roll+select.
    rows3 = jnp.concatenate([h_up, h1, h_dn], axis=-1)      # (R, 3*Cmid)

    # Column direction (kx): XLU roll on the flat (R, C) image + edge select
    # (left/right replication).  Column index via 3-D iota (no integer rem).
    col = jax.lax.broadcasted_iota(jnp.int32, (tile_h, W, 3 * Cmid), 1)
    col = col.reshape(R, 3 * Cmid)
    left = col == 0
    right = col == (W - 1)
    cols_l = jnp.where(left, rows3, pltpu.roll(rows3, 1, axis=0))       # w-1
    cols_r = jnp.where(right, rows3, pltpu.roll(rows3, R - 1, axis=0))  # w+1

    # 9 taps concatenated along lanes (kx-major, then ky, then ci) -> a single
    # (R, 9*Cmid) x (9*Cmid, Cmid) MXU pass.  Tap accumulation stays inside the
    # MXU: no VMEM accumulator RMW, no zero fill, no per-tap drains/adds.
    big = jnp.concatenate(
        [cols_l.astype(bf16), rows3.astype(bf16), cols_r.astype(bf16)],
        axis=-1)                                            # (R, 9*Cmid) bf16

    h2 = jnp.dot(big, w2_ref[...], preferred_element_type=f32)
    h2 = jnp.maximum(h2 * s2_ref[...] + b2_ref[...], 0.0)   # bn2 + relu (f32)

    # ---- conv3 (1x1) + bn3 + residual add + relu ----------------------------
    y = jnp.dot(h2.astype(bf16), w3_ref[...], preferred_element_type=f32)
    o_ref[...] = jnp.maximum(y * s3_ref[...] + b3_ref[...] + x, 0.0)


# ----------------------------- wrapper ---------------------------------------


def _round_up(x, m):
    return (x + m - 1) // m * m


def bottleneck_forward(x_nhwc, params, *, tile_h=None):
    """Bottleneck forward (stride=1, downsample=None). x_nhwc: (N, H, W, Cin)."""
    N, H, W, Cin = x_nhwc.shape
    w1, w2, w3 = params["w1"], params["w2"], params["w3"]
    planes = w1.shape[1]
    outp = w3.shape[1]
    assert Cin == outp, "stride=1 / downsample=None requires inplanes == planes*4"

    LANE = 128
    Cin_p = _round_up(Cin, LANE)
    Cmid_p = _round_up(planes, LANE)
    Cout_p = _round_up(outp, LANE)
    f32, bf16 = jnp.float32, jnp.bfloat16

    # --- lane-dense bf16 weights; w2 packed (kx, ky, ci)-major to match the
    # --- kernel's tap concat order ------------------------------------------
    w1p = jnp.zeros((Cin_p, Cmid_p), bf16).at[:Cin, :planes].set(w1.astype(bf16))
    w2f = jnp.zeros((3, 3, Cmid_p, Cmid_p), bf16)
    w2f = w2f.at[:, :, :planes, :planes].set(w2.astype(bf16))       # (ky,kx,ci,co)
    w2p = jnp.transpose(w2f, (1, 0, 2, 3)).reshape(9 * Cmid_p, Cmid_p)
    w3p = jnp.zeros((Cmid_p, Cout_p), bf16).at[:planes, :outp].set(w3.astype(bf16))

    def pad_vec(v, c):
        return jnp.zeros((1, c), f32).at[:, : v.shape[-1]].set(v.reshape(1, -1))

    s1, b1 = pad_vec(params["s1"], Cmid_p), pad_vec(params["b1"], Cmid_p)
    s2, b2 = pad_vec(params["s2"], Cmid_p), pad_vec(params["b2"], Cmid_p)
    s3, b3 = pad_vec(params["s3"], Cout_p), pad_vec(params["b3"], Cout_p)

    weight_bytes = (w1p.size + w2p.size + w3p.size) * 2

    # --- explicit per-generation VMEM budget ---------------------------------
    try:
        phys_vmem = pltpu.get_tpu_info().vmem_capacity_bytes
    except Exception:  # pragma: no cover - fall back to the v7x-safe bound
        phys_vmem = 64 << 20
    vmem_limit = max(32 << 20, min(int(phys_vmem * 3 // 4), 100 << 20))

    # --- pick the spatial tile (rows per grid step) --------------------------
    def _estimate_vmem(th):
        r = th * W
        io = 2 * r * (Cin_p + Cout_p) * 4 + 2 * (2 * W) * Cin_p * 4  # dbl-buffered
        tmp = r * (18 * Cmid_p * 4 + 9 * Cmid_p * 2)                 # h1/rolls/slab
        return io + 2 * weight_bytes + tmp

    if tile_h is None:
        budget = int(vmem_limit * 0.7)
        divisors = [d for d in range(H, 0, -1)
                    if H % d == 0 and (d * W) % 8 == 0]
        fitting = [d for d in divisors if _estimate_vmem(d) <= budget]
        if not fitting:
            fitting = [divisors[-1]] if divisors else [H]
        # prefer >= 4 grid steps so the BlockSpec pipeline has depth
        deep = [d for d in fitting if N * (H // d) >= 4]
        tile_h = deep[0] if deep else fitting[0]

    assert H % tile_h == 0, "tile_h must divide H"
    T = H // tile_h
    R = tile_h * W
    assert R % 8 == 0 and (2 * W) % 8 == 0, (
        "tile rows must be sublane aligned")  # TODO(synk): pad ragged W (7, 14)

    # --- inputs ---------------------------------------------------------------
    x2d = x_nhwc.reshape(N * H * W, Cin)
    x2d = jnp.pad(x2d, ((0, 0), (0, Cin_p - Cin)))

    # Replication-clamped halo rows (1 above, 1 below each row tile): a tiny
    # side array, so the main x tiles stay non-overlapping (x is read once).
    t_idx = jnp.arange(T, dtype=jnp.int32)
    top_rows = jnp.maximum(t_idx * tile_h - 1, 0)
    bot_rows = jnp.minimum((t_idx + 1) * tile_h, H - 1)
    halo_rows = jnp.stack([top_rows, bot_rows], axis=1)              # (T, 2)
    xh = x_nhwc[:, halo_rows]                                        # (N,T,2,W,Cin)
    xh2d = xh.reshape(N * T * 2 * W, Cin)
    xh2d = jnp.pad(xh2d, ((0, 0), (0, Cin_p - Cin)))

    kernel = functools.partial(_bottleneck_kernel, tile_h=tile_h, W=W)

    HW = H * W
    # NOTE: counts padded-lane work, not "useful" FLOPs.
    flops = (2 * N * (HW + T * 2 * W) * Cin_p * Cmid_p
             + 2 * N * HW * (9 * Cmid_p * Cmid_p + Cmid_p * Cout_p))
    bytes_accessed = (N * HW * (Cin_p + Cout_p) * 4
                      + N * T * 2 * W * Cin_p * 4
                      + weight_bytes + (4 * Cmid_p + 2 * Cout_p) * 4)

    tile_map = lambda n, t: (n * T + t, 0)
    const_map = lambda n, t: (0, 0)

    out2d = pl.pallas_call(
        kernel,
        out_shape=jax.ShapeDtypeStruct((N * HW, Cout_p), f32),
        grid_spec=pltpu.PrefetchScalarGridSpec(
            num_scalar_prefetch=0,
            grid=(N, T),
            in_specs=[
                pl.BlockSpec((R, Cin_p), tile_map),          # x tile (+residual)
                pl.BlockSpec((2 * W, Cin_p), tile_map),      # halo rows
                pl.BlockSpec((Cin_p, Cmid_p), const_map),    # w1
                pl.BlockSpec((1, Cmid_p), const_map),        # s1
                pl.BlockSpec((1, Cmid_p), const_map),        # b1
                pl.BlockSpec((9 * Cmid_p, Cmid_p), const_map),  # w2 tap slab
                pl.BlockSpec((1, Cmid_p), const_map),        # s2
                pl.BlockSpec((1, Cmid_p), const_map),        # b2
                pl.BlockSpec((Cmid_p, Cout_p), const_map),   # w3
                pl.BlockSpec((1, Cout_p), const_map),        # s3
                pl.BlockSpec((1, Cout_p), const_map),        # b3
            ],
            out_specs=pl.BlockSpec((R, Cout_p), tile_map),
        ),
        compiler_params=pltpu.CompilerParams(
            dimension_semantics=("parallel", "parallel"),
            vmem_limit_bytes=vmem_limit),
        cost_estimate=pl.CostEstimate(
            flops=flops, transcendentals=0, bytes_accessed=bytes_accessed),
    )(x2d, xh2d, w1p, s1, b1, w2p, s2, b2, w3p, s3, b3)

    return out2d[:, :outp].reshape(N, H, W, outp)


# ----------------------------- params & reference ---------------------------


def fold_bn(gamma, beta, mean, var, eps=1e-5):
    s = gamma / jnp.sqrt(var + eps)
    b = beta - mean * s
    return s.reshape(1, -1), b.reshape(1, -1)


def make_params(key, inplanes, planes, expansion=4):
    ks = jax.random.split(key, 16)
    outp = planes * expansion

    def bn_params(k, c):
        k1, k2, k3, k4 = jax.random.split(k, 4)
        gamma = 1.0 + 0.1 * jax.random.normal(k1, (c,), jnp.float32)
        beta = 0.1 * jax.random.normal(k2, (c,), jnp.float32)
        mean = 0.05 * jax.random.normal(k3, (c,), jnp.float32)
        var = 0.9 + 0.2 * jax.random.uniform(k4, (c,), jnp.float32)
        return fold_bn(gamma, beta, mean, var)

    w1 = 0.1 * jax.random.normal(ks[0], (inplanes, planes), jnp.float32)
    w2 = 0.1 * jax.random.normal(ks[1], (3, 3, planes, planes), jnp.float32)  # HWIO
    w3 = 0.1 * jax.random.normal(ks[2], (planes, outp), jnp.float32)
    s1, b1 = bn_params(ks[3], planes)
    s2, b2 = bn_params(ks[4], planes)
    s3, b3 = bn_params(ks[5], outp)
    return dict(w1=w1, w2=w2, w3=w3, s1=s1, b1=b1, s2=s2, b2=b2, s3=s3, b3=b3)


def ref_bottleneck(x_nhwc, p, matmul_dtype=jnp.float32):
    """Pure-JAX reference.  matmul_dtype=bf16 mirrors the kernel's MXU inputs."""
    md = matmul_dtype
    hi = jax.lax.Precision.HIGHEST

    def mm(a, b):
        return jnp.einsum("nhwc,cd->nhwd", a.astype(md), b.astype(md),
                          preferred_element_type=jnp.float32, precision=hi)

    h = jnp.maximum(mm(x_nhwc, p["w1"]) * p["s1"] + p["b1"], 0.0)
    hp = jnp.pad(h, ((0, 0), (1, 1), (1, 1), (0, 0)), mode="edge")
    h2 = jax.lax.conv_general_dilated(
        hp.astype(md), p["w2"].astype(md), window_strides=(1, 1), padding="VALID",
        dimension_numbers=("NHWC", "HWIO", "NHWC"),
        precision=hi, preferred_element_type=jnp.float32)
    h2 = jnp.maximum(h2 * p["s2"] + p["b2"], 0.0)
    h3 = mm(h2, p["w3"])
    return jnp.maximum(h3 * p["s3"] + p["b3"] + x_nhwc, 0.0)


# ----------------------------- main ------------------------------------------

if __name__ == "__main__":
    N, inplanes, H, W = 2, 16, 16, 16
    planes = 4  # expansion=4 -> out channels = 16 == inplanes (residual valid)

    key = jax.random.PRNGKey(0)
    kx, kp = jax.random.split(key)
    x_nchw = jax.random.normal(kx, (N, inplanes, H, W), jnp.float32)
    params = make_params(kp, inplanes, planes)

    x_nhwc = jnp.transpose(x_nchw, (0, 2, 3, 1))  # NCHW -> NHWC (channels-last)

    fwd = jax.jit(bottleneck_forward)
    out_nhwc = fwd(x_nhwc, params)
    jax.block_until_ready(out_nhwc)
    out_nchw = jnp.transpose(out_nhwc, (0, 3, 1, 2))  # module-facing layout

    # Tight check against a reference with matched (bf16-input) matmul numerics.
    ref_matched = ref_bottleneck(x_nhwc, params, matmul_dtype=jnp.bfloat16)
    err_matched = float(jnp.max(jnp.abs(out_nhwc - ref_matched)))
    # Looser check against the full-f32 module semantics (bf16 MXU inputs only).
    ref_f32 = ref_bottleneck(x_nhwc, params, matmul_dtype=jnp.float32)
    err_f32 = float(jnp.max(jnp.abs(out_nhwc - ref_f32)))

    assert err_matched < 1e-3, f"matched-precision max abs error {err_matched}"
    assert err_f32 < 2e-2, f"f32-reference max abs error {err_f32}"

    print("KERNEL_OK")
</pallas_src>

<mosaic_0001>
module attributes {stable_mosaic.version = 11 : i64} {
  func.func @_bottleneck_kernel(%arg0: i32, %arg1: i32, %arg2: memref<128x128xf32, #tpu.memory_space<vmem>>, %arg3: memref<32x128xf32, #tpu.memory_space<vmem>>, %arg4: memref<128x128xbf16, #tpu.memory_space<vmem>>, %arg5: memref<1x128xf32, #tpu.memory_space<vmem>>, %arg6: memref<1x128xf32, #tpu.memory_space<vmem>>, %arg7: memref<1152x128xbf16, #tpu.memory_space<vmem>>, %arg8: memref<1x128xf32, #tpu.memory_space<vmem>>, %arg9: memref<1x128xf32, #tpu.memory_space<vmem>>, %arg10: memref<128x128xbf16, #tpu.memory_space<vmem>>, %arg11: memref<1x128xf32, #tpu.memory_space<vmem>>, %arg12: memref<1x128xf32, #tpu.memory_space<vmem>>, %arg13: memref<128x128xf32, #tpu.memory_space<vmem>>) attributes {dimension_semantics = [#tpu.dimension_semantics<parallel>, #tpu.dimension_semantics<parallel>], iteration_bounds = array<i64: 2, 2>, scalar_prefetch = 0 : i64, scratch_operands = 0 : i64, tpu.core_type = #tpu.core_type<tc>, window_params = [{transform_indices = @transform_0, window_bounds = array<i64: 128, 128>}, {transform_indices = @transform_1, window_bounds = array<i64: 32, 128>}, {pipeline_mode = #tpu.pipeline_mode<synchronous>, transform_indices = @transform_2, window_bounds = array<i64: 128, 128>}, {pipeline_mode = #tpu.pipeline_mode<synchronous>, transform_indices = @transform_3, window_bounds = array<i64: 1, 128>}, {pipeline_mode = #tpu.pipeline_mode<synchronous>, transform_indices = @transform_4, window_bounds = array<i64: 1, 128>}, {pipeline_mode = #tpu.pipeline_mode<synchronous>, transform_indices = @transform_5, window_bounds = array<i64: 1152, 128>}, {pipeline_mode = #tpu.pipeline_mode<synchronous>, transform_indices = @transform_6, window_bounds = array<i64: 1, 128>}, {pipeline_mode = #tpu.pipeline_mode<synchronous>, transform_indices = @transform_7, window_bounds = array<i64: 1, 128>}, {pipeline_mode = #tpu.pipeline_mode<synchronous>, transform_indices = @transform_8, window_bounds = array<i64: 128, 128>}, {pipeline_mode = #tpu.pipeline_mode<synchronous>, transform_indices = @transform_9, window_bounds = array<i64: 1, 128>}, {pipeline_mode = #tpu.pipeline_mode<synchronous>, transform_indices = @transform_10, window_bounds = array<i64: 1, 128>}, {transform_indices = @transform_11, window_bounds = array<i64: 128, 128>}]} {
    %c0 = arith.constant 0 : index
    %c0_0 = arith.constant 0 : index
    %0 = vector.load %arg2[%c0, %c0_0] : memref<128x128xf32, #tpu.memory_space<vmem>>, vector<128x128xf32>
    %c0_1 = arith.constant 0 : index
    %c0_2 = arith.constant 0 : index
    %1 = vector.load %arg4[%c0_1, %c0_2] : memref<128x128xbf16, #tpu.memory_space<vmem>>, vector<128x128xbf16>
    %c0_3 = arith.constant 0 : index
    %c0_4 = arith.constant 0 : index
    %2 = vector.load %arg5[%c0_3, %c0_4] : memref<1x128xf32, #tpu.memory_space<vmem>>, vector<1x128xf32>
    %c0_5 = arith.constant 0 : index
    %c0_6 = arith.constant 0 : index
    %3 = vector.load %arg6[%c0_5, %c0_6] : memref<1x128xf32, #tpu.memory_space<vmem>>, vector<1x128xf32>
    %4 = arith.truncf %0 : vector<128x128xf32> to vector<128x128xbf16>
    %cst = arith.constant dense<0.000000e+00> : vector<128x128xf32>
    %5 = tpu.matmul %4, %1, %cst {dimension_numbers = #tpu.dot_dimension_numbers<[1], [0], [0], [1], [0, 0, 1, 1], [], []>} : vector<128x128xbf16>, vector<128x128xbf16>, vector<128x128xf32> -> vector<128x128xf32>
    %6 = vector.broadcast %2 : vector<1x128xf32> to vector<128x128xf32>
    %7 = arith.mulf %5, %6 : vector<128x128xf32>
    %8 = vector.broadcast %3 : vector<1x128xf32> to vector<128x128xf32>
    %9 = arith.addf %7, %8 : vector<128x128xf32>
    %cst_7 = arith.constant 0.000000e+00 : f32
    %10 = vector.broadcast %cst_7 : f32 to vector<128x128xf32>
    %11 = arith.maximumf %9, %10 : vector<128x128xf32>
    %c0_8 = arith.constant 0 : index
    %c0_9 = arith.constant 0 : index
    %12 = vector.load %arg3[%c0_8, %c0_9] : memref<32x128xf32, #tpu.memory_space<vmem>>, vector<32x128xf32>
    %13 = arith.truncf %12 : vector<32x128xf32> to vector<32x128xbf16>
    %cst_10 = arith.constant dense<0.000000e+00> : vector<32x128xf32>
    %14 = tpu.matmul %13, %1, %cst_10 {dimension_numbers = #tpu.dot_dimension_numbers<[1], [0], [0], [1], [0, 0, 1, 1], [], []>} : vector<32x128xbf16>, vector<128x128xbf16>, vector<32x128xf32> -> vector<32x128xf32>
    %15 = vector.broadcast %2 : vector<1x128xf32> to vector<32x128xf32>
    %16 = arith.mulf %14, %15 : vector<32x128xf32>
    %17 = vector.broadcast %3 : vector<1x128xf32> to vector<32x128xf32>
    %18 = arith.addf %16, %17 : vector<32x128xf32>
    %cst_11 = arith.constant 0.000000e+00 : f32
    %19 = vector.broadcast %cst_11 : f32 to vector<32x128xf32>
    %20 = arith.maximumf %18, %19 : vector<32x128xf32>
    %21 = vector.extract_strided_slice %20 {offsets = [0, 0], sizes = [16, 128], strides = [1, 1]} : vector<32x128xf32> to vector<16x128xf32>
    %22 = vector.extract_strided_slice %11 {offsets = [0, 0], sizes = [112, 128], strides = [1, 1]} : vector<128x128xf32> to vector<112x128xf32>
    %23 = tpu.concatenate %21, %22 in 0 : vector<16x128xf32>, vector<112x128xf32> -> vector<128x128xf32>
    %24 = vector.extract_strided_slice %11 {offsets = [16, 0], sizes = [112, 128], strides = [1, 1]} : vector<128x128xf32> to vector<112x128xf32>
    %25 = vector.extract_strided_slice %20 {offsets = [16, 0], sizes = [16, 128], strides = [1, 1]} : vector<32x128xf32> to vector<16x128xf32>
    %26 = tpu.concatenate %24, %25 in 0 : vector<112x128xf32>, vector<16x128xf32> -> vector<128x128xf32>
    %27 = tpu.concatenate %23, %11, %26 in 1 : vector<128x128xf32>, vector<128x128xf32>, vector<128x128xf32> -> vector<128x384xf32>
    %28 = tpu.iota {dimensions = array<i32: 1>} : vector<8x16x384xi32>
    %29 = vector.shape_cast %28 : vector<8x16x384xi32> to vector<128x384xi32>
    %c0_i32 = arith.constant 0 : i32
    %30 = vector.broadcast %c0_i32 : i32 to vector<128x384xi32>
    %31 = arith.cmpi eq, %29, %30 : vector<128x384xi32>
    %c15_i32 = arith.constant 15 : i32
    %32 = vector.broadcast %c15_i32 : i32 to vector<128x384xi32>
    %33 = arith.cmpi eq, %29, %32 : vector<128x384xi32>
    %c1_i32 = arith.constant 1 : i32
    %34 = tpu.dynamic_rotate %27 by %c1_i32 dim 0 : vector<128x384xf32>, i32 -> vector<128x384xf32>
    %35 = arith.select %31, %27, %34 : vector<128x384xi1>, vector<128x384xf32>
    %c127_i32 = arith.constant 127 : i32
    %36 = tpu.dynamic_rotate %27 by %c127_i32 dim 0 : vector<128x384xf32>, i32 -> vector<128x384xf32>
    %37 = arith.select %33, %27, %36 : vector<128x384xi1>, vector<128x384xf32>
    %38 = arith.truncf %35 : vector<128x384xf32> to vector<128x384xbf16>
    %39 = arith.truncf %27 : vector<128x384xf32> to vector<128x384xbf16>
    %40 = arith.truncf %37 : vector<128x384xf32> to vector<128x384xbf16>
    %41 = tpu.concatenate %38, %39, %40 in 1 : vector<128x384xbf16>, vector<128x384xbf16>, vector<128x384xbf16> -> vector<128x1152xbf16>
    %c0_12 = arith.constant 0 : index
    %c0_13 = arith.constant 0 : index
    %42 = vector.load %arg7[%c0_12, %c0_13] : memref<1152x128xbf16, #tpu.memory_space<vmem>>, vector<1152x128xbf16>
    %cst_14 = arith.constant dense<0.000000e+00> : vector<128x128xf32>
    %43 = tpu.matmul %41, %42, %cst_14 {dimension_numbers = #tpu.dot_dimension_numbers<[1], [0], [0], [1], [0, 0, 1, 1], [], []>} : vector<128x1152xbf16>, vector<1152x128xbf16>, vector<128x128xf32> -> vector<128x128xf32>
    %c0_15 = arith.constant 0 : index
    %c0_16 = arith.constant 0 : index
    %44 = vector.load %arg8[%c0_15, %c0_16] : memref<1x128xf32, #tpu.memory_space<vmem>>, vector<1x128xf32>
    %45 = vector.broadcast %44 : vector<1x128xf32> to vector<128x128xf32>
    %46 = arith.mulf %43, %45 : vector<128x128xf32>
    %c0_17 = arith.constant 0 : index
    %c0_18 = arith.constant 0 : index
    %47 = vector.load %arg9[%c0_17, %c0_18] : memref<1x128xf32, #tpu.memory_space<vmem>>, vector<1x128xf32>
    %48 = vector.broadcast %47 : vector<1x128xf32> to vector<128x128xf32>
    %49 = arith.addf %46, %48 : vector<128x128xf32>
    %cst_19 = arith.constant 0.000000e+00 : f32
    %50 = vector.broadcast %cst_19 : f32 to vector<128x128xf32>
    %51 = arith.maximumf %49, %50 : vector<128x128xf32>
    %52 = arith.truncf %51 : vector<128x128xf32> to vector<128x128xbf16>
    %c0_20 = arith.constant 0 : index
    %c0_21 = arith.constant 0 : index
    %53 = vector.load %arg10[%c0_20, %c0_21] : memref<128x128xbf16, #tpu.memory_space<vmem>>, vector<128x128xbf16>
    %cst_22 = arith.constant dense<0.000000e+00> : vector<128x128xf32>
    %54 = tpu.matmul %52, %53, %cst_22 {dimension_numbers = #tpu.dot_dimension_numbers<[1], [0], [0], [1], [0, 0, 1, 1], [], []>} : vector<128x128xbf16>, vector<128x128xbf16>, vector<128x128xf32> -> vector<128x128xf32>
    %c0_23 = arith.constant 0 : index
    %c0_24 = arith.constant 0 : index
    %55 = vector.load %arg11[%c0_23, %c0_24] : memref<1x128xf32, #tpu.memory_space<vmem>>, vector<1x128xf32>
    %56 = vector.broadcast %55 : vector<1x128xf32> to vector<128x128xf32>
    %57 = arith.mulf %54, %56 : vector<128x128xf32>
    %c0_25 = arith.constant 0 : index
    %c0_26 = arith.constant 0 : index
    %58 = vector.load %arg12[%c0_25, %c0_26] : memref<1x128xf32, #tpu.memory_space<vmem>>, vector<1x128xf32>
    %59 = vector.broadcast %58 : vector<1x128xf32> to vector<128x128xf32>
    %60 = arith.addf %57, %59 : vector<128x128xf32>
    %61 = arith.addf %60, %0 : vector<128x128xf32>
    %cst_27 = arith.constant 0.000000e+00 : f32
    %62 = vector.broadcast %cst_27 : f32 to vector<128x128xf32>
    %63 = arith.maximumf %61, %62 : vector<128x128xf32>
    %c0_28 = arith.constant 0 : index
    %c0_29 = arith.constant 0 : index
    %64 = vector.load %arg13[%c0_28, %c0_29] : memref<128x128xf32, #tpu.memory_space<vmem>>, vector<128x128xf32>
    tpu.vector_store %arg13[%c0_28, %c0_29], %63 {strides = array<i32>} : memref<128x128xf32, #tpu.memory_space<vmem>>, vector<128x128xf32>,
    return
  }
  func.func @transform_0(%arg0: i32, %arg1: i32) -> (i32, i32) {
    %c2_i32 = arith.constant 2 : i32
    %0 = arith.muli %arg0, %c2_i32 : i32
    %1 = arith.addi %0, %arg1 : i32
    %c0_i32 = arith.constant 0 : i32
    %c0_i32_0 = arith.constant 0 : i32
    return %1, %c0_i32 : i32, i32
  }
  func.func @transform_1(%arg0: i32, %arg1: i32) -> (i32, i32) {
    %c2_i32 = arith.constant 2 : i32
    %0 = arith.muli %arg0, %c2_i32 : i32
    %1 = arith.addi %0, %arg1 : i32
    %c0_i32 = arith.constant 0 : i32
    %c0_i32_0 = arith.constant 0 : i32
    return %1, %c0_i32 : i32, i32
  }
  func.func @transform_2(%arg0: i32, %arg1: i32) -> (i32, i32) {
    %c0_i32 = arith.constant 0 : i32
    %c0_i32_0 = arith.constant 0 : i32
    %c0_i32_1 = arith.constant 0 : i32
    return %c0_i32, %c0_i32_0 : i32, i32
  }
  func.func @transform_3(%arg0: i32, %arg1: i32) -> (i32, i32) {
    %c0_i32 = arith.constant 0 : i32
    %c0_i32_0 = arith.constant 0 : i32
    %c0_i32_1 = arith.constant 0 : i32
    return %c0_i32, %c0_i32_0 : i32, i32
  }
  func.func @transform_4(%arg0: i32, %arg1: i32) -> (i32, i32) {
    %c0_i32 = arith.constant 0 : i32
    %c0_i32_0 = arith.constant 0 : i32
    %c0_i32_1 = arith.constant 0 : i32
    return %c0_i32, %c0_i32_0 : i32, i32
  }
  func.func @transform_5(%arg0: i32, %arg1: i32) -> (i32, i32) {
    %c0_i32 = arith.constant 0 : i32
    %c0_i32_0 = arith.constant 0 : i32
    %c0_i32_1 = arith.constant 0 : i32
    return %c0_i32, %c0_i32_0 : i32, i32
  }
  func.func @transform_6(%arg0: i32, %arg1: i32) -> (i32, i32) {
    %c0_i32 = arith.constant 0 : i32
    %c0_i32_0 = arith.constant 0 : i32
    %c0_i32_1 = arith.constant 0 : i32
    return %c0_i32, %c0_i32_0 : i32, i32
  }
  func.func @transform_7(%arg0: i32, %arg1: i32) -> (i32, i32) {
    %c0_i32 = arith.constant 0 : i32
    %c0_i32_0 = arith.constant 0 : i32
    %c0_i32_1 = arith.constant 0 : i32
    return %c0_i32, %c0_i32_0 : i32, i32
  }
  func.func @transform_8(%arg0: i32, %arg1: i32) -> (i32, i32) {
    %c0_i32 = arith.constant 0 : i32
    %c0_i32_0 = arith.constant 0 : i32
    %c0_i32_1 = arith.constant 0 : i32
    return %c0_i32, %c0_i32_0 : i32, i32
  }
  func.func @transform_9(%arg0: i32, %arg1: i32) -> (i32, i32) {
    %c0_i32 = arith.constant 0 : i32
    %c0_i32_0 = arith.constant 0 : i32
    %c0_i32_1 = arith.constant 0 : i32
    return %c0_i32, %c0_i32_0 : i32, i32
  }
  func.func @transform_10(%arg0: i32, %arg1: i32) -> (i32, i32) {
    %c0_i32 = arith.constant 0 : i32
    %c0_i32_0 = arith.constant 0 : i32
    %c0_i32_1 = arith.constant 0 : i32
    return %c0_i32, %c0_i32_0 : i32, i32
  }
  func.func @transform_11(%arg0: i32, %arg1: i32) -> (i32, i32) {
    %c2_i32 = arith.constant 2 : i32
    %0 = arith.muli %arg0, %c2_i32 : i32
    %1 = arith.addi %0, %arg1 : i32
    %c0_i32 = arith.constant 0 : i32
    %c0_i32_0 = arith.constant 0 : i32
    return %1, %c0_i32 : i32, i32
  }
}

</mosaic_0001>

<bundles_post_ra>
// kernel: bottleneck_forward.1
= control target key start
LH: loop header
LB: loop body
LE: loop exit
PB: predicated region body
PF: predicated region fallthrough
CT: control target
= control target key end

     0   :  { %16 = vsyncpa [#allocation3], 0  ;;  %s5042_s0 = inlined_call_operand.vmem [shape: f32[512,128], index: 0, kind: input, shape index: {}]   ;;  %s5043_s1 = inlined_call_operand.vmem [shape: f32[128,128], index: 1, kind: input, shape index: {}]   ;;  %s5044_s2 = inlined_call_operand.vmem [shape: bf16[128,128], index: 2, kind: input, shape index: {}]   ;;  %s5045_s3 = inlined_call_operand.vmem [shape: f32[1,128], index: 3, kind: input, shape index: {}]   ;;  %s5046_s4 = inlined_call_operand.vmem [shape: f32[1,128], index: 4, kind: input, shape index: {}]   ;;  %s5047_s5 = inlined_call_operand.vmem [shape: bf16[1152,128], index: 5, kind: input, shape index: {}]   ;;  %s5048_s6 = inlined_call_operand.vmem [shape: f32[1,128], index: 6, kind: input, shape index: {}]   ;;  %s5049_s7 = inlined_call_operand.vmem [shape: f32[1,128], index: 7, kind: input, shape index: {}]   ;;  %s5050_s8 = inlined_call_operand.vmem [shape: bf16[128,128], index: 8, kind: input, shape index: {}]   ;;  %s5051_s9 = inlined_call_operand.vmem [shape: f32[1,128], index: 9, kind: input, shape index: {}]   ;;  %s5052_s10 = inlined_call_operand.vmem [shape: f32[1,128], index: 10, kind: input, shape index: {}]   ;;  %s5053_s11 = inlined_call_operand.hbm [shape: f32[512,128], index: 11, kind: output, shape index: {}]  }
   0x1   :  { %18 = vsyncpa [#allocation3 + $0x1], 0  ;;  %s3432_s17 = smov 0   ;;  %s3434_s18 = smov 0  }
   0x2   :  { %s3436_s19 = smov 0   ;;  %s3438_s20 = smov 0  }
   0x3   :  { %s3440_s21 = smov 0   ;;  %s3442_s22 = smov 0  }
   0x4   :  { %s3444_s23 = smov 0   ;;  %s3446_s24 = smov 0  }
   0x5 LB: > { %5085 = sst [smem:[#allocation5_spill]] %s3360_s22  ;;  %s2690_s25 = sadd.s32 4294967295, %s3368_s24   ;;  %s3368_s24 = sphi %s3446_s24, %s24_s24   ;;  %s3364_s23 = sphi %s3444_s23, %s5237_s23   ;;  %s3360_s22 = sphi %s3442_s22, %s5236_s22   ;;  %s3356_s21 = sphi %s3440_s21, %s5235_s21   ;;  %s3352_s20 = sphi %s3438_s20, %s5234_s20   ;;  %s3348_s19 = sphi %s3436_s19, %s5240_s19   ;;  %s3344_s18 = sphi %s3434_s18, %s5239_s18   ;;  %s3340_s17 = sphi %s3432_s17, %s5238_s17  }
   0x6   : > { %5086 = sst [smem:[#allocation6_spill]] %s3364_s23  ;;  %s33_s26 = sadd.s32 1, %s3360_s22 }
   0x7   : > { %s36_s27 = sadd.s32 1, %s3364_s23  ;;  %p34_p0 = scmp.ge.s32.totalorder %s33_s26, 2 }
   0x8   : > { %s2696_s28 = sshll.u32 %s3364_s23, 1  ;;  %s2691_s29 = sadd.s32 4294967294, %s3368_s24  }
   0x9   : > { %s290_s30 = sadd.s32 %s3360_s22, %s2696_s28  ;;  %s5242_s26 = smov (%p34_p0, %s33_s26), 0 }
   0xa   : > { %5087 = sst [smem:[#allocation7_spill]] %s5242_s26  ;;  %s5244_s27 = smov (!%p34_p0, %s36_s27), %s3364_s23 }
   0xb   : > { %p306_p1 = scmp.ne.s32.totalorder %s3348_s19, %s3344_s18  ;;  %p307_p2 = scmp.eq.s32.totalorder %s2690_s25, 3 }
   0xc   : > { %p38_p3 = scmp.ge.s32.totalorder %s5244_s27, 2  ;;  %p312_p4 = scmp.ne.s32.totalorder %s3344_s18, %s3340_s17 }
   0xd   : > { %p3485_p5 = por %p307_p2, %p306_p1  ;;  %p313_p6 = scmp.eq.s32.totalorder %s2691_s29, 3 }
   0xe   : > { %s5246_s27 = smov (%p38_p3, %s5244_s27), 0  ;;  %p2700_p8 = scmp.ge.s32.totalorder %s3368_s24, 1 }
   0xf   : > { %5089 = sst [smem:[#allocation8_spill]] %s5246_s27  ;;  %p3491_p7 = por %p313_p6, %p312_p4 }
  0x10   : > { %s2697_s14 = sshll.u32 %s5246_s27, 1  ;;  %p384_p9 = scmp.lt.s32.totalorder %s3368_s24, 5 }
  0x11   : > { %s5090_s13 = scalar_select %p3491_p7, 1, 0 }
  0x12   : > { %s292_s15 = sadd.s32 %s2697_s14, %s5242_s26  ;;  %s296_s16 = sadd.s32 1, %s3348_s19 }
  0x13   : > { %5091 = sst [smem:[#allocation9_spill]] %s5090_s13  ;;  %s293_s25 = ssub.s32 %s290_s30, %s292_s15 }
  0x14   : > { %p385_p10 = pnand %p2700_p8, %p384_p9  ;;  %p294_p11 = scmp.eq.s32.totalorder %s293_s25, 0 }
  0x16   : > { %s3501_s28 = scalar_select %p294_p11, %s3348_s19, %s296_s16  }
  0x17   : > { %388 = sbr.rel (%p385_p10) target bundleno = 977 (0x3d1), region = 64 }
  0x18   : > { %5092 = sst [smem:[#allocation10_spill]] %s3501_s28 }
  0x1c   : > { %v3073_v0 = vld [vmem:[%s5044_s2 + $0x38] sm:$0xff]  ;;  %v3072_v1 = vld [vmem:[%s5044_s2 + $0x30] sm:$0xff]  ;;  %s2702_s14 = sshll.u32 %s3356_s21, 1  ;;  %v3071_v2 = vld [vmem:[%s5044_s2 + $0x28] sm:$0xff]  ;;  %v686_v62 = vlaneseq }
  0x1d   : > { %546 = vmatpush.bf16.msra.mxu0 %v3073_v0  ;;  %655 = vmatpush.bf16.msra.mxu1 %v3073_v0  ;;  %s3511_s27 = sadd.s32 %s3352_s20, %s2702_s14  ;;  %v3070_v3 = vld [vmem:[%s5044_s2 + $0x20] sm:$0xff]  ;;  %v3069_v4 = vld [vmem:[%s5044_s2 + $0x18] sm:$0xff]  ;;  %v3068_v5 = vld [vmem:[%s5044_s2 + $0x10] sm:$0xff] }
  0x1e   : > { %s2703_s23 = sshll.u32 %s3511_s27, 4  ;;  %s2706_s16 = sshll.u32 %s3511_s27, 2  ;;  %v3067_v6 = vld [vmem:[%s5044_s2 + $0x8] sm:$0xff]  ;;  %v3066_v7 = vld [vmem:[%s5044_s2] sm:$0xff]  ;;  %v3105_v32 = vld [vmem:[%s5047_s5 + $0xf8] sm:$0xff] }
  0x1f   : > { %p436_p12 = scmp.lt.s32.totalorder %s2703_s23, 63  ;;  %p446_p13 = scmp.lt.s32.totalorder %s2706_s16, 15  ;;  %v3104_v33 = vld [vmem:[%s5047_s5 + $0xf0] sm:$0xff]  ;;  %v3103_v34 = vld [vmem:[%s5047_s5 + $0xe8] sm:$0xff]  ;;  %v3102_v38 = vld [vmem:[%s5047_s5 + $0xe0] sm:$0xff] }
  0x20   : > { %v3101_v39 = vld [vmem:[%s5047_s5 + $0xd8] sm:$0xff]  ;;  %v3100_v41 = vld [vmem:[%s5047_s5 + $0xd0] sm:$0xff]  ;;  %v3099_v45 = vld [vmem:[%s5047_s5 + $0xc8] sm:$0xff]  ;;  %s3154_s29 = sshll.u32 %s3511_s27, 7 }
  0x21   : > { %547 = vmatpush.bf16.msra.mxu0 %v3072_v1  ;;  %656 = vmatpush.bf16.msra.mxu1 %v3072_v1  ;;  %s5248_s23 = smov (!%p436_p12, %s2703_s23), 63  ;;  %s5250_s16 = smov (!%p446_p13, %s2706_s16), 15  ;;  %v3097_v40 = vld [vmem:[%s5047_s5 + $0xb8] sm:$0xff]  ;;  %v3096_v44 = vld [vmem:[%s5047_s5 + $0xb0] sm:$0xff]  ;;  %v3095_v47 = vld [vmem:[%s5047_s5 + $0xa8] sm:$0xff] }
  0x22   : > { %s2704_s14 = sshll.u32 %s5248_s23, 3  ;;  %s2707_s30 = sshll.u32 %s5250_s16, 3  ;;  %v3098_v48 = vld [vmem:[%s5047_s5 + $0xc0] sm:$0xff]  ;;  %v3093_v50 = vld [vmem:[%s5047_s5 + $0x98] sm:$0xff]  ;;  %v3092_v51 = vld [vmem:[%s5047_s5 + $0x90] sm:$0xff] }
  0x23   : > { %s3533_s20 = scalar_lea.vmem %s5042_s0, %s2704_s14  ;;  %s449_s23 = scalar_lea.vmem %s5043_s1, %s2707_s30  ;;  %v3094_v49 = vld [vmem:[%s5047_s5 + $0xa0] sm:$0xff]  ;;  %v3091_v55 = vld [vmem:[%s5047_s5 + $0x88] sm:$0xff] }
  0x24   : > { %v456_v8 = vld [vmem:[%s3533_s20] sm:$0xff]  ;;  %v457_v9 = vld [vmem:[%s3533_s20 + $0x8] sm:$0xff]  ;;  %v458_v14 = vld [vmem:[%s3533_s20 + $0x10] sm:$0xff]  ;;  %s430_s30 = sand.u32 1, %s3344_s18   ;;  %s2599_s16 = scalar_lea.hbm %s5053_s11, %s3154_s29 }
  0x25   : > { %548 = vmatpush.bf16.msra.mxu0 %v3071_v2  ;;  %657 = vmatpush.bf16.msra.mxu1 %v3071_v2  ;;  %v649_v10 = vld [vmem:[%s449_s23] sm:$0xff]  ;;  %v650_v11 = vld [vmem:[%s449_s23 + $0x8] sm:$0xff]  ;;  %v490_v12 = vpack.c.bf16 %v457_v9, %v456_v8  ;;  %v459_v15 = vld [vmem:[%s3533_s20 + $0x18] sm:$0xff]  ;;  %s2701_s15 = sshll.u32 %s430_s30, 7  ;;  %s2602_s22 = sshll.u32 %s2599_s16, 4  ;;  %s2603_s22 = int_to_ptr.hbm [resolvable:$true] %s2602_s22 }
  0x26   : > { %v653_v13 = vpack.c.bf16 %v650_v11, %v649_v10  ;;  %v651_v16 = vld [vmem:[%s449_s23 + $0x10] sm:$0xff]  ;;  %v652_v17 = vld [vmem:[%s449_s23 + $0x18] sm:$0xff]  ;;  %v491_v18 = vpack.c.bf16 %v459_v15, %v458_v14  ;;  %v460_v20 = vld [vmem:[%s3533_s20 + $0x20] sm:$0xff]  ;;  %s4912_s25 = scalar_lea.vmem [#allocation2], %s2701_s15  ;;  %s2586_s27 = scalar_lea.sflag [#allocation3], %s430_s30 }
  0x27   : > { %v654_v19 = vpack.c.bf16 %v652_v17, %v651_v16  ;;  %v461_v21 = vld [vmem:[%s3533_s20 + $0x28] sm:$0xff]  ;;  %v462_v23 = vld [vmem:[%s3533_s20 + $0x30] sm:$0xff]  ;;  %v463_v24 = vld [vmem:[%s3533_s20 + $0x38] sm:$0xff]  ;;  %s2600_s26 = sshll.u32 %s4912_s25, 4  ;;  %s3288_s28 = sshra.s32 %s2603_s22, 4  ;;  %s2601_s26 = int_to_ptr.vmem [resolvable:$true] %s2600_s26  ;;  %s3289_s28 = int_to_ptr.hbm [resolvable:$true] %s3288_s28 }
  0x28   : > { %v492_v22 = vpack.c.bf16 %v461_v21, %v460_v20  ;;  %v493_v25 = vpack.c.bf16 %v463_v24, %v462_v23  ;;  %v464_v26 = vld [vmem:[%s3533_s20 + $0x40] sm:$0xff]  ;;  %v465_v27 = vld [vmem:[%s3533_s20 + $0x48] sm:$0xff]  ;;  %v466_v29 = vld [vmem:[%s3533_s20 + $0x50] sm:$0xff]  ;;  %s3290_s13 = scalar_lea.hbm %s3289_s28, 128  ;;  %s3294_s29 = scalar_lea.hbm %s5053_s11, 512 }
  0x29   : > { %549 = vmatpush.bf16.msra.mxu0 %v3070_v3  ;;  %658 = vmatpush.bf16.msra.mxu1 %v3070_v3  ;;  %v494_v28 = vpack.c.bf16 %v465_v27, %v464_v26  ;;  %v467_v30 = vld [vmem:[%s3533_s20 + $0x58] sm:$0xff]  ;;  %v468_v35 = vld [vmem:[%s3533_s20 + $0x60] sm:$0xff]  ;;  %v469_v36 = vld [vmem:[%s3533_s20 + $0x68] sm:$0xff]  ;;  %p3291_p0 = scmp.ne.s32.totalorder %s3289_s28, %s3290_s13  ;;  %p3295_p3 = scmp.lt.s32.totalorder %s3289_s28, %s5053_s11 }
  0x2a   : > { %v495_v31 = vpack.c.bf16 %v467_v30, %v466_v29  ;;  %v496_v37 = vpack.c.bf16 %v469_v36, %v468_v35  ;;  %v470_v42 = vld [vmem:[%s3533_s20 + $0x70] sm:$0xff]  ;;  %v471_v43 = vld [vmem:[%s3533_s20 + $0x78] sm:$0xff]  ;;  %v3602_v52 = vld [vmem:[%s5045_s3] ss:$0 sm:$0xff]  ;;  %p3296_p4 = scmp.lt.s32.totalorder %s3294_s29, %s3290_s13 }
  0x2b   : > { %v497_v46 = vpack.c.bf16 %v471_v43, %v470_v42  ;;  %v3611_v57 = vld [vmem:[%s5046_s4] ss:$0 sm:$0xff]  ;;  %p3292_p1 = pnand %p3291_p0, %p3485_p5 }
  0x2c   : > { %v3090_v59 = vld [vmem:[%s5047_s5 + $0x80] sm:$0xff]  ;;  %p3297_p6 = por %p3296_p4, %p3295_p3 }
  0x2d   : > { %550 = vmatpush.bf16.msra.mxu0 %v3069_v4  ;;  %659 = vmatpush.bf16.msra.mxu1 %v3069_v4  ;;  %p3293_p2 = pneg %p3292_p1 }
  0x2f   : > { %p3298_p8 = pnand %p3297_p6, %p3293_p2 }
  0x31   : > { %551 = vmatpush.bf16.msra.mxu0 %v3068_v5  ;;  %660 = vmatpush.bf16.msra.mxu1 %v3068_v5  ;;  %v3625_v5 = vshrl.u32 %v686_v62, 7 }
  0x33   : > { %vm713_vm0 = vcmp.lt.s32.totalorder %v3625_v5, 1  ;;  %vm778_vm1 = vcmp.lt.s32.totalorder %v3625_v5, 7  ;;  %v3641_v21 = vadd.s32 8, %v3625_v5  ;;  %vm689_vm3 = vcmp.eq.s32.totalorder %v3625_v5, 0 }
  0x35   : > { %552 = vmatpush.bf16.msra.mxu0 %v3067_v6  ;;  %661 = vmatpush.bf16.msra.mxu1 %v3067_v6  ;;  %vm692_vm2 = vcmp.eq.s32.totalorder %v3641_v21, 15 }
  0x39   : > { %553 = vmatpush.bf16.msra.mxu0 %v3066_v7  ;;  %662 = vmatpush.bf16.msra.mxu1 %v3066_v7 }
  0x3c   : > { %554 = vmatmul.bf16.vlgmr.msra.gmra.mxu0 %v490_v12  ;;  %663 = vmatmul.bf16.vlgmr.msra.gmra.mxu1 %v653_v13 }
  0x3d   : > { %2026 = vmatpush.bf16.msrb.mxu0 %v3105_v32  ;;  %1977 = vmatpush.bf16.msrb.mxu1 %v3097_v40 }
  0x41   : > { %2027 = vmatpush.bf16.msrb.mxu0 %v3104_v33  ;;  %1978 = vmatpush.bf16.msrb.mxu1 %v3096_v44 }
  0x45   : > { %2028 = vmatpush.bf16.msrb.mxu0 %v3103_v34  ;;  %1979 = vmatpush.bf16.msrb.mxu1 %v3095_v47 }
  0x49   : > { %2029 = vmatpush.bf16.msrb.mxu0 %v3102_v38  ;;  %1980 = vmatpush.bf16.msrb.mxu1 %v3094_v49 }
  0x4c   : > { %559 = vmatmul.bf16.gmra.mxu0 %v491_v18  ;;  %668 = vmatmul.bf16.gmra.mxu1 %v654_v19 }
  0x4d   : > { %2030 = vmatpush.bf16.msrb.mxu0 %v3101_v39  ;;  %1981 = vmatpush.bf16.msrb.mxu1 %v3093_v50 }
  0x51   : > { %2031 = vmatpush.bf16.msrb.mxu0 %v3100_v41  ;;  %1982 = vmatpush.bf16.msrb.mxu1 %v3092_v51 }
  0x55   : > { %2032 = vmatpush.bf16.msrb.mxu0 %v3099_v45  ;;  %1983 = vmatpush.bf16.msrb.mxu1 %v3091_v55 }
  0x59   : > { %2033 = vmatpush.bf16.msrb.mxu0 %v3098_v48  ;;  %1984 = vmatpush.bf16.msrb.mxu1 %v3090_v59 }
  0x5c   : > { %564 = vmatmul.bf16.gmra.mxu0 %v492_v22 }
  0x6c   : > { %569 = vmatmul.bf16.gmra.mxu0 %v493_v25 }
  0x7c   : > { %574 = vmatmul.bf16.gmra.mxu0 %v494_v28 }
  0x8c   : > { %579 = vmatmul.bf16.gmra.mxu0 %v495_v31 }
  0x9c   : > { %584 = vmatmul.bf16.gmra.mxu0 %v496_v37 }
  0xac   : > { %589 = vmatmul.bf16.gmra.mxu0 %v497_v46 }
  0xb9   : > { %v555_v53 = vpop.f32.mrf.mxu0  ;;  %v664_v54 = vpop.f32.mrf.mxu1 }
  0xba   : > { %v598_v56 = vmul.f32 %v3602_v52, %v555_v53  ;;  %v674_v58 = vmul.f32 %v3602_v52, %v664_v54 }
  0xbc   : > { %v617_v60 = vadd.f32 %v3611_v57, %v598_v56  ;;  %v678_v61 = vadd.f32 %v3611_v57, %v674_v58 }
  0xbe   : > { %v3621_v3 = vmax.f32 %v617_v60, 0.0  ;;  %v3623_v4 = vmax.f32 %v678_v61, 0.0 }
  0xc0   : > { %v5060_v8 = vrot.slane %v3623_v4, 1  ;;  %v855_v11 = vpack.c.bf16 %v3621_v3, %v3623_v4  ;;  %v5061_v12 = vrot.slane %v3623_v4, 7  ;;  %v3638_v19 = vrot.slane %v3621_v3, 7 }
  0xc1   : > { %v557_v63 = vpop.f32.mrf.mxu0  ;;  %v666_v0 = vpop.f32.mrf.mxu1  ;;  %v3644_v22 = vrot.slane %v3621_v3, 1 }
  0xc2   : > { %v599_v1 = vmul.f32 %v3602_v52, %v557_v63  ;;  %v675_v2 = vmul.f32 %v3602_v52, %v666_v0  ;;  %v1079_v25 = vunpack.c.l.b16 %v855_v11  ;;  %v1080_v34 = vunpack.c.h.b16 %v855_v11 }
  0xc4   : > { %v618_v6 = vadd.f32 %v3611_v57, %v599_v1  ;;  %v679_v7 = vadd.f32 %v3611_v57, %v675_v2 }
  0xc6   : > { %v634_v9 = vmax.f32 %v618_v6, 0.0  ;;  %v683_v10 = vmax.f32 %v679_v7, 0.0 }
  0xc8   : > { %v762_v13 = vrot.slane %v634_v9, 1  ;;  %v761_v14 = vrot.slane %v683_v10, 1  ;;  %v857_v15 = vpack.c.bf16 %v634_v9, %v683_v10  ;;  %v696_v16 = vrot.slane %v683_v10, 7 }
  0xc9   : > { %v560_v17 = vpop.f32.mrf.mxu0  ;;  %v3635_v18 = vpop.f32.mrf.mxu1  ;;  %v697_v20 = vrot.slane %v634_v9, 7 }
  0xca   : > { %v797_v23 = vsel %vm778_vm1, %v5060_v8, %v761_v14  ;;  %v600_v24 = vmul.f32 %v3602_v52, %v560_v17  ;;  %v1082_v26 = vunpack.c.l.b16 %v857_v15  ;;  %v732_v28 = vsel %vm713_vm0, %v5061_v12, %v696_v16 }
  0xcb   : > { %v730_v27 = vsel %vm713_vm0, %v3638_v19, %v697_v20  ;;  %v795_v31 = vsel %vm778_vm1, %v3644_v22, %v762_v13  ;;  %v1083_v35 = vunpack.c.h.b16 %v857_v15  ;;  %v796_v37 = vsel %vm778_vm1, %v761_v14, %v3644_v22 }
  0xcc   : > { %v619_v29 = vadd.f32 %v3611_v57, %v600_v24  ;;  %v3659_v30 = vpack.c.bf16 %v730_v27, %v732_v28  ;;  %v1127_v32 = vpack.c.b16 %v1082_v26, %v1079_v25  ;;  %v887_v33 = vpack.c.bf16 %v795_v31, %v797_v23 }
  0xcd   : > { %v3670_v38 = vpack.c.b16 %v1083_v35, %v1080_v34  ;;  %v731_v41 = vsel %vm713_vm0, %v696_v16, %v3638_v19  ;;  %v804_v44 = vsel %vm692_vm2, %v683_v10, %v796_v37 }
  0xce   : > { %v3664_v36 = vmax.f32 %v619_v29, 0.0  ;;  %2034 = vmatmul.bf16.vlgmr.msrb.gmra.mxu0 %v1127_v32  ;;  %v742_v51 = vsel %vm689_vm3, %v3621_v3, %v731_v41  ;;  %v1208_v58 = vunpack.c.h.b16 %v887_v33  ;;  %v1207_v1 = vunpack.c.l.b16 %v887_v33 }
  0xcf   : > { %5093 = vst [vmem:[#allocation11_spill] sm:$0xff] %v3670_v38 }
  0xd0   : > { %v695_v39 = vrot.slane %v3664_v36, 7  ;;  %v3675_v40 = vrot.slane %v3664_v36, 1  ;;  %v3689_v48 = vpack.c.bf16 %v3664_v36, %v3621_v3  ;;  %v856_v2 = vpack.c.bf16 %v3664_v36, %v3664_v36 }
  0xd1   : > { %v562_v42 = vpop.f32.mrf.mxu0  ;;  %v671_v43 = vpop.f32.mrf.mxu1 }
  0xd2   : > { %5094 = vst [vmem:[#allocation12_spill] sm:$0xff] %v3675_v40  ;;  %v601_v45 = vmul.f32 %v3602_v52, %v562_v42  ;;  %v677_v46 = vmul.f32 %v3602_v52, %v671_v43  ;;  %v794_v47 = vsel %vm778_vm1, %v762_v13, %v3675_v40  ;;  %v729_v50 = vsel %vm713_vm0, %v697_v20, %v695_v39 }
  0xd3   : > { %v3693_v49 = vsel %vm692_vm2, %v634_v9, %v794_v47  ;;  %v3706_v56 = vsel %vm689_vm3, %v3664_v36, %v729_v50  ;;  %v1085_v0 = vunpack.c.l.b16 %v3689_v48  ;;  %v3756_v47 = vunpack.c.l.b16 %v856_v2 }
  0xd4   : > { %v620_v53 = vadd.f32 %v3611_v57, %v601_v45  ;;  %v681_v54 = vadd.f32 %v3611_v57, %v677_v46  ;;  %v889_v55 = vpack.c.bf16 %v3693_v49, %v804_v44  ;;  %v827_v59 = vpack.c.bf16 %v3706_v56, %v742_v51 }
  0xd5   : > { %5096 = vst [vmem:[#allocation14_spill] sm:$0xff] %v3756_v47 }
  0xd6   : > { %v3709_v60 = vmax.f32 %v620_v53, 0.0  ;;  %v3711_v61 = vmax.f32 %v681_v54, 0.0  ;;  %v1211_v62 = vunpack.c.h.b16 %v889_v55  ;;  %v1210_v63 = vunpack.c.l.b16 %v889_v55 }
  0xd7   : > { %v957_v14 = vunpack.c.l.b16 %v827_v59  ;;  %v958_v35 = vunpack.c.h.b16 %v827_v59 }
  0xd8   : > { %v5059_v6 = vrot.slane %v3711_v61, 7  ;;  %v861_v7 = vpack.c.bf16 %v3709_v60, %v634_v9  ;;  %v698_v10 = vrot.slane %v3709_v60, 7  ;;  %v3719_v11 = vpack.c.b16 %v1211_v62, %v1208_v58 }
  0xd9   : > { %v565_v13 = vpop.f32.mrf.mxu0  ;;  %v763_v15 = vrot.slane %v3709_v60, 1  ;;  %v3722_v16 = vpack.c.b16 %v1210_v63, %v1207_v1  ;;  %v858_v17 = vpack.c.bf16 %v3709_v60, %v3709_v60  ;;  %v1086_v58 = vunpack.c.h.b16 %v3689_v48 }
  0xda   : > { %v602_v20 = vmul.f32 %v3602_v52, %v565_v13  ;;  %v1088_v23 = vunpack.c.l.b16 %v861_v7  ;;  %v3729_v24 = vsel %vm713_vm0, %v695_v39, %v698_v10  ;;  %v735_v9 = vsel %vm713_vm0, %v5059_v6, %v695_v39 }
  0xdb   : > { %v738_v25 = vsel %vm689_vm3, %v3664_v36, %v735_v9  ;;  %v826_v26 = vpack.c.bf16 %v3729_v24, %v3729_v24  ;;  %v829_v28 = vpack.c.bf16 %v3729_v24, %v730_v27  ;;  %v3744_v29 = vsel %vm778_vm1, %v3675_v40, %v763_v15 }
  0xdc   : > { %v621_v32 = vadd.f32 %v3611_v57, %v602_v20  ;;  %v1130_v33 = vpack.c.b16 %v1088_v23, %v1085_v0  ;;  %v824_v34 = vpack.c.bf16 %v738_v25, %v738_v25  ;;  %v891_v42 = vpack.c.bf16 %v3744_v29, %v795_v31 }
  0xdd   : > { %v956_v37 = vunpack.c.l.b16 %v826_v26  ;;  %v960_v39 = vunpack.c.l.b16 %v829_v28  ;;  %v961_v41 = vunpack.c.h.b16 %v829_v28  ;;  %v3750_v45 = vunpack.c.l.b16 %v858_v17 }
  0xde   : > { %v3748_v43 = vmax.f32 %v621_v32, 0.0  ;;  %v953_v44 = vunpack.c.l.b16 %v824_v34  ;;  %2039 = vmatmul.bf16.gmra.mxu0 %v1130_v33  ;;  %v888_v31 = vpack.c.bf16 %v3744_v29, %v3744_v29  ;;  %v1089_v59 = vunpack.c.h.b16 %v861_v7 }
  0xdf   : > { %5095 = vst [vmem:[#allocation13_spill] sm:$0xff] %v3750_v45  ;;  %v3752_v27 = vpack.c.b16 %v960_v39, %v957_v14  ;;  %v3754_v46 = vpack.c.b16 %v961_v41, %v958_v35  ;;  %v1214_v20 = vunpack.c.h.b16 %v891_v42  ;;  %v1213_v28 = vunpack.c.l.b16 %v891_v42 }
  0xe0   : > { %v1001_v50 = vpack.c.b16 %v956_v37, %v953_v44  ;;  %v699_v51 = vrot.slane %v3748_v43, 7  ;;  %v764_v53 = vrot.slane %v3748_v43, 1  ;;  %v863_v63 = vpack.c.bf16 %v3748_v43, %v3664_v36 }
  0xe1   : > { %v567_v54 = vpop.f32.mrf.mxu0  ;;  %v3782_v7 = vpack.c.b16 %v1089_v59, %v1086_v58  ;;  %v860_v36 = vpack.c.bf16 %v3748_v43, %v3748_v43  ;;  %v3793_v17 = vunpack.c.l.b16 %v888_v31 }
  0xe2   : > { %v603_v62 = vmul.f32 %v3602_v52, %v567_v54  ;;  %1985 = vmatmul.bf16.vlgmr.msrb.gmra.mxu1 %v1001_v50  ;;  %v727_v0 = vsel %vm713_vm0, %v698_v10, %v699_v51  ;;  %v792_v1 = vsel %vm778_vm1, %v763_v15, %v764_v53  ;;  %v1091_v32 = vunpack.c.l.b16 %v863_v63 }
  0xe3   : > { %v3775_v2 = vsel %vm689_vm3, %v3748_v43, %v727_v0  ;;  %v3780_v48 = vsel %vm692_vm2, %v3709_v60, %v792_v1  ;;  %5097 = vst [vmem:[#allocation15_spill] sm:$0xff] %v3782_v7  ;;  %v3801_v34 = vunpack.c.l.b16 %v860_v36 }
  0xe4   : > { %v622_v10 = vadd.f32 %v3611_v57, %v603_v62  ;;  %v890_v13 = vpack.c.bf16 %v3780_v48, %v3780_v48  ;;  %v893_v14 = vpack.c.bf16 %v3780_v48, %v3693_v49  ;;  %v828_v15 = vpack.c.bf16 %v3775_v2, %v3775_v2  ;;  %5098 = vst [vmem:[#allocation16_spill] sm:$0xff] %v3793_v17 }
  0xe5   : > { %v831_v23 = vpack.c.bf16 %v3775_v2, %v3706_v56  ;;  %5100 = vst [vmem:[#allocation18_spill] sm:$0xff] %v3801_v34  ;;  %v1092_v49 = vunpack.c.h.b16 %v863_v63 }
  0xe6   : > { %v3797_v9 = vmax.f32 %v622_v10, 0.0  ;;  %v3799_v25 = vunpack.c.l.b16 %v890_v13  ;;  %v1217_v26 = vunpack.c.h.b16 %v893_v14  ;;  %v1216_v33 = vunpack.c.l.b16 %v893_v14 }
  0xe7   : > { %v959_v44 = vunpack.c.l.b16 %v828_v15  ;;  %v963_v0 = vunpack.c.l.b16 %v831_v23 }
  0xe8   : > { %5099 = vst [vmem:[#allocation17_spill] sm:$0xff] %v3799_v25  ;;  %v865_v35 = vpack.c.bf16 %v3797_v9, %v3709_v60  ;;  %v700_v37 = vrot.slane %v3797_v9, 7  ;;  %v3806_v39 = vpack.c.b16 %v1217_v26, %v1214_v20  ;;  %v765_v56 = vrot.slane %v3797_v9, 1 }
  0xe9   : > { %v570_v41 = vpop.f32.mrf.mxu0  ;;  %v3809_v50 = vpack.c.b16 %v1216_v33, %v1213_v28  ;;  %v862_v42 = vpack.c.bf16 %v3797_v9, %v3797_v9  ;;  %v964_v26 = vunpack.c.h.b16 %v831_v23 }
  0xea   : > { %v604_v31 = vmul.f32 %v3602_v52, %v570_v41  ;;  %v1094_v58 = vunpack.c.l.b16 %v865_v35  ;;  %v726_v60 = vsel %vm713_vm0, %v699_v51, %v700_v37  ;;  %v791_v59 = vsel %vm778_vm1, %v764_v53, %v765_v56 }
  0xeb   : > { %v830_v62 = vpack.c.bf16 %v726_v60, %v726_v60  ;;  %v833_v63 = vpack.c.bf16 %v726_v60, %v3729_v24  ;;  %v895_v1 = vpack.c.bf16 %v791_v59, %v3744_v29  ;;  %v3823_v13 = vunpack.c.l.b16 %v862_v42 }
  0xec   : > { %v623_v36 = vadd.f32 %v3611_v57, %v604_v31  ;;  %v1133_v10 = vpack.c.b16 %v1094_v58, %v1091_v32  ;;  %v1095_v14 = vunpack.c.h.b16 %v865_v35  ;;  %v892_v23 = vpack.c.bf16 %v791_v59, %v791_v59 }
  0xed   : > { %5101 = vst [vmem:[#allocation19_spill] sm:$0xff] %v3823_v13  ;;  %v962_v15 = vunpack.c.l.b16 %v830_v62  ;;  %v966_v20 = vunpack.c.l.b16 %v833_v63  ;;  %v967_v28 = vunpack.c.h.b16 %v833_v63 }
  0xee   : > { %v3825_v51 = vmax.f32 %v623_v36, 0.0  ;;  %2044 = vmatmul.bf16.gmra.mxu0 %v1133_v10  ;;  %v3833_v41 = vpack.c.b16 %v1095_v14, %v1092_v49  ;;  %v3863_v10 = vunpack.c.l.b16 %v892_v23  ;;  %v1220_v14 = vunpack.c.h.b16 %v895_v1 }
  0xef   : > { %v1004_v24 = vpack.c.b16 %v962_v15, %v959_v44  ;;  %v3829_v33 = vpack.c.b16 %v966_v20, %v963_v0  ;;  %v3831_v29 = vpack.c.b16 %v967_v28, %v964_v26 }
  0xf0   : > { %5102 = vst [vmem:[#allocation20_spill] sm:$0xff] %v3833_v41  ;;  %v701_v32 = vrot.slane %v3825_v51, 7  ;;  %v766_v35 = vrot.slane %v3825_v51, 1  ;;  %v867_v62 = vpack.c.bf16 %v3825_v51, %v3748_v43  ;;  %v864_v0 = vpack.c.bf16 %v3825_v51, %v3825_v51 }
  0xf1   : > { %v572_v42 = vpop.f32.mrf.mxu0  ;;  %5103 = vst [vmem:[#allocation21_spill] sm:$0xff] %v3863_v10 }
  0xf2   : > { %v605_v31 = vmul.f32 %v3602_v52, %v572_v42  ;;  %1990 = vmatmul.bf16.gmra.mxu1 %v1004_v24  ;;  %v725_v58 = vsel %vm713_vm0, %v700_v37, %v701_v32  ;;  %v790_v44 = vsel %vm778_vm1, %v765_v56, %v766_v35  ;;  %v1219_v24 = vunpack.c.l.b16 %v895_v1 }
  0xf3   : > { %v3847_v49 = vsel %vm689_vm3, %v3825_v51, %v725_v58  ;;  %v3852_v63 = vsel %vm692_vm2, %v3797_v9, %v790_v44  ;;  %v1097_v42 = vunpack.c.l.b16 %v867_v62  ;;  %v3871_v58 = vunpack.c.l.b16 %v864_v0 }
  0xf4   : > { %v624_v37 = vadd.f32 %v3611_v57, %v605_v31  ;;  %v894_v56 = vpack.c.bf16 %v3852_v63, %v3852_v63  ;;  %v897_v43 = vpack.c.bf16 %v3852_v63, %v3780_v48  ;;  %v832_v36 = vpack.c.bf16 %v3847_v49, %v3847_v49 }
  0xf5   : > { %v835_v15 = vpack.c.bf16 %v3847_v49, %v3775_v2  ;;  %5105 = vst [vmem:[#allocation23_spill] sm:$0xff] %v3871_v58  ;;  %v1098_v48 = vunpack.c.h.b16 %v867_v62 }
  0xf6   : > { %v3867_v20 = vmax.f32 %v624_v37, 0.0  ;;  %v3869_v26 = vunpack.c.l.b16 %v894_v56  ;;  %v1223_v28 = vunpack.c.h.b16 %v897_v43  ;;  %v1222_v31 = vunpack.c.l.b16 %v897_v43 }
  0xf7   : > { %v965_v53 = vunpack.c.l.b16 %v832_v36  ;;  %v969_v55 = vunpack.c.l.b16 %v835_v15  ;;  %v970_v12 = vunpack.c.h.b16 %v835_v15 }
  0xf8   : > { %5104 = vst [vmem:[#allocation22_spill] sm:$0xff] %v3869_v26  ;;  %v869_v44 = vpack.c.bf16 %v3867_v20, %v3797_v9  ;;  %v702_v23 = vrot.slane %v3867_v20, 7  ;;  %v3876_v54 = vpack.c.b16 %v1223_v28, %v1220_v14  ;;  %v767_v2 = vrot.slane %v3867_v20, 1 }
  0xf9   : > { %v575_v37 = vpop.f32.mrf.mxu0  ;;  %v3879_v56 = vpack.c.b16 %v1222_v31, %v1219_v24  ;;  %v866_v1 = vpack.c.bf16 %v3867_v20, %v3867_v20 }
  0xfa   : > { %v606_v62 = vmul.f32 %v3602_v52, %v575_v37  ;;  %v1100_v43 = vunpack.c.l.b16 %v869_v44  ;;  %v3888_v9 = vsel %vm713_vm0, %v701_v32, %v702_v23  ;;  %v3892_v14 = vsel %vm778_vm1, %v766_v35, %v767_v2 }
  0xfb   : > { %5106 = vst [vmem:[#allocation24_spill] sm:$0xff] %v3879_v56  ;;  %v834_v36 = vpack.c.bf16 %v3888_v9, %v3888_v9  ;;  %v837_v28 = vpack.c.bf16 %v3888_v9, %v726_v60  ;;  %v899_v24 = vpack.c.bf16 %v3892_v14, %v791_v59  ;;  %v3898_v31 = vunpack.c.l.b16 %v866_v1 }
  0xfc   : > { %v625_v37 = vadd.f32 %v3611_v57, %v606_v62  ;;  %v1136_v0 = vpack.c.b16 %v1100_v43, %v1097_v42  ;;  %v1101_v6 = vunpack.c.h.b16 %v869_v44 }
  0xfd   : > { %5107 = vst [vmem:[#allocation25_spill] sm:$0xff] %v3898_v31  ;;  %v968_v32 = vunpack.c.l.b16 %v834_v36  ;;  %v972_v8 = vunpack.c.l.b16 %v837_v28  ;;  %v973_v40 = vunpack.c.h.b16 %v837_v28 }
  0xfe   : > { %v3901_v35 = vmax.f32 %v625_v37, 0.0  ;;  %v3905_v26 = vpack.c.b16 %v1101_v6, %v1098_v48  ;;  %2049 = vmatmul.bf16.gmra.mxu0 %v1136_v0  ;;  %v3081_v6 = vld [vmem:[%s5047_s5 + $0x38] sm:$0xff]  ;;  %v1226_v0 = vunpack.c.h.b16 %v899_v24  ;;  %v1225_v37 = vunpack.c.l.b16 %v899_v24 }
  0xff   : > { %v1007_v60 = vpack.c.b16 %v968_v32, %v965_v53  ;;  %v3907_v59 = vpack.c.b16 %v972_v8, %v969_v55  ;;  %v3909_v1 = vpack.c.b16 %v973_v40, %v970_v12  ;;  %v3089_v8 = vld [vmem:[%s5047_s5 + $0x78] sm:$0xff]  ;;  %v896_v40 = vpack.c.bf16 %v3892_v14, %v3892_v14  ;;  %1879 = vmatpush.bf16.msra.mxu2 %v3081_v6 }
 0x100   : > { %5108 = vst [vmem:[#allocation26_spill] sm:$0xff] %v3905_v26  ;;  %v703_v42 = vrot.slane %v3901_v35, 7  ;;  %v768_v44 = vrot.slane %v3901_v35, 1  ;;  %v871_v55 = vpack.c.bf16 %v3901_v35, %v3825_v51  ;;  %1928 = vmatpush.bf16.msra.mxu3 %v3089_v8 }
 0x101   : > { %v577_v62 = vpop.f32.mrf.mxu0  ;;  %v3957_v6 = vunpack.c.l.b16 %v896_v40 }
 0x102   : > { %v607_v15 = vmul.f32 %v3602_v52, %v577_v62  ;;  %1995 = vmatmul.bf16.gmra.mxu1 %v1007_v60  ;;  %v723_v43 = vsel %vm713_vm0, %v702_v23, %v703_v42  ;;  %v788_v12 = vsel %vm778_vm1, %v767_v2, %v768_v44  ;;  %v868_v23 = vpack.c.bf16 %v3901_v35, %v3901_v35  ;;  %v3080_v62 = vld [vmem:[%s5047_s5 + $0x30] sm:$0xff] }
 0x103   : > { %v3931_v53 = vsel %vm689_vm3, %v3901_v35, %v723_v43  ;;  %v3936_v48 = vsel %vm692_vm2, %v3867_v20, %v788_v12  ;;  %5109 = vst [vmem:[#allocation27_spill] sm:$0xff] %v3957_v6  ;;  %v1103_v8 = vunpack.c.l.b16 %v871_v55  ;;  %v1104_v24 = vunpack.c.h.b16 %v871_v55  ;;  %1880 = vmatpush.bf16.msra.mxu2 %v3080_v62 }
 0x104   : > { %v626_v2 = vadd.f32 %v3611_v57, %v607_v15  ;;  %v901_v51 = vpack.c.bf16 %v3936_v48, %v3852_v63  ;;  %v836_v36 = vpack.c.bf16 %v3931_v53, %v3931_v53  ;;  %v839_v28 = vpack.c.bf16 %v3931_v53, %v3847_v49  ;;  %v3088_v63 = vld [vmem:[%s5047_s5 + $0x70] sm:$0xff] }
 0x105   : > { %v898_v32 = vpack.c.bf16 %v3936_v48, %v3936_v48  ;;  %v3959_v49 = vunpack.c.l.b16 %v868_v23  ;;  %1929 = vmatpush.bf16.msra.mxu3 %v3088_v63 }
 0x106   : > { %v3949_v60 = vmax.f32 %v626_v2, 0.0  ;;  %v1229_v15 = vunpack.c.h.b16 %v901_v51  ;;  %v1228_v43 = vunpack.c.l.b16 %v901_v51  ;;  %v971_v40 = vunpack.c.l.b16 %v836_v36  ;;  %v3087_v36 = vld [vmem:[%s5047_s5 + $0x68] sm:$0xff] }
 0x107   : > { %5110 = vst [vmem:[#allocation28_spill] sm:$0xff] %v3959_v49  ;;  %v3961_v12 = vunpack.c.l.b16 %v898_v32  ;;  %v975_v6 = vunpack.c.l.b16 %v839_v28  ;;  %v976_v31 = vunpack.c.h.b16 %v839_v28 }
 0x108   : > { %v873_v2 = vpack.c.bf16 %v3949_v60, %v3867_v20  ;;  %v704_v10 = vrot.slane %v3949_v60, 7  ;;  %v3966_v17 = vpack.c.b16 %v1229_v15, %v1226_v0  ;;  %v769_v25 = vrot.slane %v3949_v60, 1  ;;  %v3079_v0 = vld [vmem:[%s5047_s5 + $0x28] sm:$0xff] }
 0x109   : > { %5111 = vst [vmem:[#allocation29_spill] sm:$0xff] %v3961_v12  ;;  %v580_v51 = vpop.f32.mrf.mxu0  ;;  %v3969_v26 = vpack.c.b16 %v1228_v43, %v1225_v37  ;;  %v870_v55 = vpack.c.bf16 %v3949_v60, %v3949_v60  ;;  %1881 = vmatpush.bf16.msra.mxu2 %v3079_v0  ;;  %1930 = vmatpush.bf16.msra.mxu3 %v3087_v36 }
 0x10a   : > { %v608_v20 = vmul.f32 %v3602_v52, %v580_v51  ;;  %v1106_v32 = vunpack.c.l.b16 %v873_v2  ;;  %v3978_v62 = vsel %vm713_vm0, %v703_v42, %v704_v10  ;;  %v3988_v37 = vsel %vm778_vm1, %v768_v44, %v769_v25 }
 0x10b   : > { %5112 = vst [vmem:[#allocation30_spill] sm:$0xff] %v3969_v26  ;;  %v838_v63 = vpack.c.bf16 %v3978_v62, %v3978_v62  ;;  %v841_v15 = vpack.c.bf16 %v3978_v62, %v3888_v9  ;;  %v3996_v42 = vpack.c.bf16 %v3988_v37, %v3892_v14  ;;  %v3998_v43 = vunpack.c.l.b16 %v870_v55  ;;  %v3078_v9 = vld [vmem:[%s5047_s5 + $0x20] sm:$0xff] }
 0x10c   : > { %v627_v51 = vadd.f32 %v3611_v57, %v608_v20  ;;  %v1139_v23 = vpack.c.b16 %v1106_v32, %v1103_v8  ;;  %v1107_v44 = vunpack.c.h.b16 %v873_v2  ;;  %v3086_v14 = vld [vmem:[%s5047_s5 + $0x60] sm:$0xff]  ;;  %v4012_v8 = vld [vmem:[%s5047_s5 + $0x1f8] sm:$0xff] }
 0x10d   : > { %5113 = vst [vmem:[#allocation31_spill] sm:$0xff] %v3998_v43  ;;  %v974_v12 = vunpack.c.l.b16 %v838_v63  ;;  %v978_v58 = vunpack.c.l.b16 %v841_v15  ;;  %v979_v41 = vunpack.c.h.b16 %v841_v15  ;;  %1882 = vmatpush.bf16.msra.mxu2 %v3078_v9  ;;  %1931 = vmatpush.bf16.msra.mxu3 %v3086_v14  ;;  %v1232_v9 = vunpack.c.h.b16 %v3996_v42 }
 0x10e   : > { %v4001_v34 = vmax.f32 %v627_v51, 0.0  ;;  %v4016_v28 = vpack.c.b16 %v1107_v44, %v1104_v24  ;;  %2054 = vmatmul.bf16.gmra.mxu0 %v1139_v23  ;;  %v4061_v51 = vmul.f32 %v3602_v52, %v3635_v18  ;;  %v1231_v18 = vunpack.c.l.b16 %v3996_v42 }
 0x10f   : > { %v1010_v55 = vpack.c.b16 %v974_v12, %v971_v40  ;;  %v4018_v20 = vpack.c.b16 %v978_v58, %v975_v6  ;;  %v4020_v32 = vpack.c.b16 %v979_v41, %v976_v31  ;;  %2222 = vmatpush.bf16.msra.mxu0 %v4012_v8  ;;  %v3077_v41 = vld [vmem:[%s5047_s5 + $0x18] sm:$0xff]  ;;  %v4037_v31 = vld [vmem:[%s5047_s5 + $0x1f0] sm:$0xff]  ;;  %v900_v12 = vpack.c.bf16 %v3988_v37, %v3988_v37 }
 0x110   : > { %5114 = vst [vmem:[#allocation32_spill] sm:$0xff] %v4016_v28  ;;  %v705_v0 = vrot.slane %v4001_v34, 7  ;;  %v770_v36 = vrot.slane %v4001_v34, 1  ;;  %v3085_v58 = vld [vmem:[%s5047_s5 + $0x58] sm:$0xff] }
 0x111   : > { %5115 = vst [vmem:[#allocation33_spill] sm:$0xff] %v4020_v32  ;;  %v582_v63 = vpop.f32.mrf.mxu0  ;;  %1883 = vmatpush.bf16.msra.mxu2 %v3077_v41  ;;  %1932 = vmatpush.bf16.msra.mxu3 %v3085_v58  ;;  %v4086_v41 = vld [vmem:[%s5047_s5 + $0x1e8] sm:$0xff]  ;;  %v4088_v58 = vunpack.c.l.b16 %v900_v12 }
 0x112   : > { %v609_v15 = vmul.f32 %v3602_v52, %v582_v63  ;;  %2000 = vmatmul.bf16.gmra.mxu1 %v1010_v55  ;;  %v721_v24 = vsel %vm713_vm0, %v704_v10, %v705_v0  ;;  %v786_v6 = vsel %vm778_vm1, %v769_v25, %v770_v36  ;;  %v4045_v10 = vpack.c.bf16 %v4001_v34, %v3901_v35  ;;  %v3075_v12 = vld [vmem:[%s5047_s5 + $0x8] sm:$0xff] }
 0x113   : > { %v4050_v40 = vsel %vm689_vm3, %v4001_v34, %v721_v24  ;;  %v4055_v23 = vsel %vm692_vm2, %v3949_v60, %v786_v6  ;;  %v872_v25 = vpack.c.bf16 %v4001_v34, %v4001_v34  ;;  %2223 = vmatpush.bf16.msra.mxu0 %v4037_v31  ;;  %v3084_v24 = vld [vmem:[%s5047_s5 + $0x50] sm:$0xff]  ;;  %5116 = vst [vmem:[#allocation34_spill] sm:$0xff] %v4088_v58 }
 0x114   : > { %v628_v35 = vadd.f32 %v3611_v57, %v609_v15  ;;  %v905_v44 = vpack.c.bf16 %v4055_v23, %v3936_v48  ;;  %v840_v14 = vpack.c.bf16 %v4050_v40, %v4050_v40  ;;  %v843_v55 = vpack.c.bf16 %v4050_v40, %v3931_v53  ;;  %v3076_v48 = vld [vmem:[%s5047_s5 + $0x10] sm:$0xff] }
 0x115   : > { %v902_v63 = vpack.c.bf16 %v4055_v23, %v4055_v23  ;;  %v1109_v6 = vunpack.c.l.b16 %v4045_v10  ;;  %v1110_v2 = vunpack.c.h.b16 %v4045_v10  ;;  %1884 = vmatpush.bf16.msra.mxu2 %v3076_v48  ;;  %1933 = vmatpush.bf16.msra.mxu3 %v3084_v24 }
 0x116   : > { %v4075_v15 = vmax.f32 %v628_v35, 0.0  ;;  %v1235_v53 = vunpack.c.h.b16 %v905_v44  ;;  %v1234_v42 = vunpack.c.l.b16 %v905_v44  ;;  %v4091_v35 = vunpack.c.l.b16 %v872_v25  ;;  %v3083_v25 = vld [vmem:[%s5047_s5 + $0x48] sm:$0xff] }
 0x117   : > { %v4094_v28 = vunpack.c.l.b16 %v902_v63  ;;  %v977_v13 = vunpack.c.l.b16 %v840_v14  ;;  %2224 = vmatpush.bf16.msra.mxu0 %v4086_v41 }
 0x118   : > { %5117 = vst [vmem:[#allocation35_spill] sm:$0xff] %v4091_v35  ;;  %v877_v49 = vpack.c.bf16 %v4075_v15, %v3949_v60  ;;  %v706_v43 = vrot.slane %v4075_v15, 7  ;;  %v4105_v44 = vpack.c.b16 %v1235_v53, %v1232_v9  ;;  %v771_v10 = vrot.slane %v4075_v15, 1  ;;  %v4112_v60 = vld [vmem:[%s5047_s5 + $0x1e0] sm:$0xff] }
 0x119   : > { %5118 = vst [vmem:[#allocation36_spill] sm:$0xff] %v4094_v28  ;;  %v585_v63 = vpop.f32.mrf.mxu0  ;;  %v4114_v48 = vpack.c.b16 %v1234_v42, %v1231_v18  ;;  %v874_v24 = vpack.c.bf16 %v4075_v15, %v4075_v15  ;;  %1885 = vmatpush.bf16.msra.mxu2 %v3075_v12  ;;  %1934 = vmatpush.bf16.msra.mxu3 %v3083_v25  ;;  %v981_v28 = vunpack.c.l.b16 %v843_v55 }
 0x11a   : > { %5119 = vst [vmem:[#allocation37_spill] sm:$0xff] %v4105_v44  ;;  %v610_v53 = vmul.f32 %v3602_v52, %v585_v63  ;;  %v1112_v7 = vunpack.c.l.b16 %v877_v49  ;;  %v4123_v14 = vsel %vm713_vm0, %v705_v0, %v706_v43  ;;  %v4127_v47 = vsel %vm778_vm1, %v770_v36, %v771_v10 }
 0x11b   : > { %5120 = vst [vmem:[#allocation38_spill] sm:$0xff] %v4114_v48  ;;  %v842_v18 = vpack.c.bf16 %v4123_v14, %v4123_v14  ;;  %v845_v42 = vpack.c.bf16 %v4123_v14, %v3978_v62  ;;  %v4135_v9 = vpack.c.bf16 %v4127_v47, %v3988_v37  ;;  %v4137_v63 = vunpack.c.l.b16 %v874_v24  ;;  %2225 = vmatpush.bf16.msra.mxu0 %v4112_v60  ;;  %v3074_v37 = vld [vmem:[%s5047_s5] sm:$0xff] }
 0x11c   : > { %v629_v58 = vadd.f32 %v3611_v57, %v610_v53  ;;  %v1142_v0 = vpack.c.b16 %v1112_v7, %v1109_v6  ;;  %v1113_v36 = vunpack.c.h.b16 %v877_v49  ;;  %v982_v48 = vunpack.c.h.b16 %v843_v55  ;;  %v3082_v7 = vld [vmem:[%s5047_s5 + $0x40] sm:$0xff]  ;;  %v4152_v49 = vld [vmem:[%s5047_s5 + $0x1d8] sm:$0xff] }
 0x11d   : > { %5121 = vst [vmem:[#allocation39_spill] sm:$0xff] %v4137_v63  ;;  %v980_v45 = vunpack.c.l.b16 %v842_v18  ;;  %v984_v38 = vunpack.c.l.b16 %v845_v42  ;;  %v985_v26 = vunpack.c.h.b16 %v845_v42  ;;  %1886 = vmatpush.bf16.msra.mxu2 %v3074_v37  ;;  %1935 = vmatpush.bf16.msra.mxu3 %v3082_v7  ;;  %v680_v18 = vadd.f32 %v3611_v57, %v4061_v51 }
 0x11e   : > { %v4141_v62 = vmax.f32 %v629_v58, 0.0  ;;  %v4156_v55 = vpack.c.b16 %v1113_v36, %v1110_v2  ;;  %2059 = vmatmul.bf16.gmra.mxu0 %v1142_v0  ;;  %v904_v51 = vpack.c.bf16 %v4127_v47, %v4127_v47  ;;  %v3128_v0 = vld [vmem:[%s5047_s5 + $0x1b0] sm:$0xff] }
 0x11f   : > { %v1013_v58 = vpack.c.b16 %v980_v45, %v977_v13  ;;  %v4158_v12 = vpack.c.b16 %v984_v38, %v981_v28  ;;  %v4160_v25 = vpack.c.b16 %v985_v26, %v982_v48  ;;  %2226 = vmatpush.bf16.msra.mxu0 %v4152_v49  ;;  %v3129_v45 = vld [vmem:[%s5047_s5 + $0x1b8] sm:$0xff]  ;;  %v4176_v13 = vld [vmem:[%s5047_s5 + $0x1d0] sm:$0xff]  ;;  %v4201_v7 = vmax.f32 %v680_v18, 0.0 }
 0x120   : > { %5122 = vst [vmem:[#allocation40_spill] sm:$0xff] %v4156_v55  ;;  %v707_v24 = vrot.slane %v4141_v62, 7  ;;  %v772_v53 = vrot.slane %v4141_v62, 1  ;;  %v3113_v28 = vld [vmem:[%s5047_s5 + $0x138] sm:$0xff]  ;;  %2173 = vmatpush.bf16.msra.mxu1 %v3129_v45  ;;  %v876_v35 = vpack.c.bf16 %v4141_v62, %v4141_v62 }
 0x121   : > { %5123 = vst [vmem:[#allocation41_spill] sm:$0xff] %v4158_v12  ;;  %v587_v42 = vpop.f32.mrf.mxu0  ;;  %2075 = vmatpush.bf16.msrb.mxu2 %v3113_v28  ;;  %v3127_v12 = vld [vmem:[%s5047_s5 + $0x1a8] sm:$0xff] }
 0x122   : > { %5124 = vst [vmem:[#allocation42_spill] sm:$0xff] %v4160_v25  ;;  %v611_v2 = vmul.f32 %v3602_v52, %v587_v42  ;;  %2005 = vmatmul.bf16.gmra.mxu1 %v1013_v58  ;;  %v717_v38 = vsel %vm713_vm0, %v706_v43, %v707_v24  ;;  %v782_v43 = vsel %vm778_vm1, %v771_v10, %v772_v53  ;;  %v4211_v58 = vld [vmem:[%s5047_s5 + $0x1c8] sm:$0xff]  ;;  %v4272_v32 = vunpack.c.l.b16 %v876_v35 }
 0x123   : > { %v4181_v26 = vsel %vm689_vm3, %v4141_v62, %v717_v38  ;;  %v4197_v36 = vsel %vm692_vm2, %v4075_v15, %v782_v43  ;;  %v4205_v10 = vpack.c.bf16 %v4141_v62, %v4001_v34  ;;  %2227 = vmatpush.bf16.msra.mxu0 %v4176_v13  ;;  %v1237_v38 = vunpack.c.l.b16 %v4135_v9 }
 0x124   : > { %v630_v48 = vadd.f32 %v3611_v57, %v611_v2  ;;  %v847_v37 = vpack.c.bf16 %v4181_v26, %v4050_v40  ;;  %v909_v42 = vpack.c.bf16 %v4197_v36, %v4055_v23  ;;  %v906_v40 = vpack.c.bf16 %v4197_v36, %v4197_v36  ;;  %2174 = vmatpush.bf16.msra.mxu1 %v3128_v0 }
 0x125   : > { %v844_v34 = vpack.c.bf16 %v4181_v26, %v4181_v26  ;;  %v1238_v2 = vunpack.c.h.b16 %v4135_v9  ;;  %v4223_v43 = vunpack.c.l.b16 %v904_v51  ;;  %v1115_v9 = vunpack.c.l.b16 %v4205_v10 }
 0x126   : > { %v4217_v18 = vmax.f32 %v630_v48, 0.0  ;;  %v1241_v45 = vunpack.c.h.b16 %v909_v42  ;;  %v1240_v28 = vunpack.c.l.b16 %v909_v42  ;;  %v4225_v6 = vunpack.c.l.b16 %v906_v40 }
 0x127   : > { %5125 = vst [vmem:[#allocation43_spill] sm:$0xff] %v4223_v43  ;;  %2228 = vmatpush.bf16.msra.mxu0 %v4211_v58  ;;  %v988_v44 = vunpack.c.h.b16 %v847_v37 }
 0x128   : > { %5126 = vst [vmem:[#allocation44_spill] sm:$0xff] %v4225_v6  ;;  %v881_v23 = vpack.c.bf16 %v4217_v18, %v4075_v15  ;;  %v708_v55 = vrot.slane %v4217_v18, 7  ;;  %v773_v48 = vrot.slane %v4217_v18, 1  ;;  %v4235_v51 = vpack.c.b16 %v1241_v45, %v1238_v2  ;;  %v4252_v2 = vld [vmem:[%s5047_s5 + $0x1c0] sm:$0xff]  ;;  %2175 = vmatpush.bf16.msra.mxu1 %v3127_v12 }
 0x129   : > { %v590_v63 = vpop.f32.mrf.mxu0  ;;  %v4237_v42 = vpack.c.b16 %v1240_v28, %v1237_v38  ;;  %v878_v38 = vpack.c.bf16 %v4217_v18, %v4217_v18  ;;  %v983_v45 = vunpack.c.l.b16 %v844_v34  ;;  %v987_v6 = vunpack.c.l.b16 %v847_v37 }
 0x12a   : > { %5127 = vst [vmem:[#allocation45_spill] sm:$0xff] %v4235_v51  ;;  %v612_v40 = vmul.f32 %v3602_v52, %v590_v63  ;;  %v1118_v0 = vunpack.c.l.b16 %v881_v23  ;;  %v4244_v25 = vsel %vm713_vm0, %v707_v24, %v708_v55  ;;  %v4262_v28 = vsel %vm778_vm1, %v772_v53, %v773_v48 }
 0x12b   : > { %5128 = vst [vmem:[#allocation46_spill] sm:$0xff] %v4237_v42  ;;  %v846_v63 = vpack.c.bf16 %v4244_v25, %v4244_v25  ;;  %v849_v24 = vpack.c.bf16 %v4244_v25, %v4123_v14  ;;  %v4267_v42 = vpack.c.bf16 %v4262_v28, %v4127_v47  ;;  %2229 = vmatpush.bf16.msra.mxu0 %v4252_v2  ;;  %v4274_v53 = vunpack.c.l.b16 %v878_v38  ;;  %v3126_v47 = vld [vmem:[%s5047_s5 + $0x1a0] sm:$0xff] }
 0x12c   : > { %v631_v15 = vadd.f32 %v3611_v57, %v612_v40  ;;  %v1145_v43 = vpack.c.b16 %v1118_v0, %v1115_v9  ;;  %v1116_v9 = vunpack.c.h.b16 %v4205_v10  ;;  %v1119_v37 = vunpack.c.h.b16 %v881_v23  ;;  %2176 = vmatpush.bf16.msra.mxu1 %v3126_v47 }
 0x12d   : > { %v986_v51 = vunpack.c.l.b16 %v846_v63  ;;  %v990_v34 = vunpack.c.l.b16 %v849_v24  ;;  %v991_v56 = vunpack.c.h.b16 %v849_v24  ;;  %v5129_v63 = vrot.slane %v3623_v4, 7 }
 0x12e   : > { %v4270_v14 = vmax.f32 %v631_v15, 0.0  ;;  %2064 = vmatmul.bf16.gmra.mxu0 %v1145_v43 }
 0x12f   : > { %v1016_v12 = vpack.c.b16 %v986_v51, %v983_v45  ;;  %v4280_v40 = vpack.c.b16 %v990_v34, %v987_v6  ;;  %v4282_v0 = vpack.c.b16 %v991_v56, %v988_v44  ;;  %v733_v6 = vsel %vm713_vm0, %v708_v55, %v5129_v63 }
 0x130   : > { %v774_v15 = vrot.slane %v4270_v14, 1  ;;  %v709_v38 = vrot.slane %v4270_v14, 7  ;;  %v4295_v44 = vpack.c.b16 %v1119_v37, %v1116_v9  ;;  %v5131_v34 = vrot.slane %v3623_v4, 1 }
 0x131   : > { %v592_v51 = vpop.f32.mrf.mxu0 }
 0x132   : > { %5130 = vst [vmem:[#allocation47_spill] sm:$0xff] %v4295_v44  ;;  %v613_v23 = vmul.f32 %v3602_v52, %v592_v51  ;;  %2010 = vmatmul.bf16.gmra.mxu1 %v1016_v12  ;;  %v718_v45 = vsel %vm713_vm0, %v708_v55, %v709_v38  ;;  %v783_v24 = vsel %vm778_vm1, %v773_v48, %v774_v15  ;;  %v3112_v52 = vld [vmem:[%s5047_s5 + $0x130] sm:$0xff]  ;;  %v3125_v51 = vld [vmem:[%s5047_s5 + $0x198] sm:$0xff] }
 0x133   : > { %v798_v10 = vsel %vm778_vm1, %v773_v48, %v5131_v34  ;;  %v754_v47 = vsel %vm689_vm3, %v4270_v14, %v718_v45  ;;  %v816_v55 = vsel %vm692_vm2, %v4217_v18, %v783_v24  ;;  %v908_v12 = vpack.c.bf16 %v4262_v28, %v4262_v28  ;;  %2076 = vmatpush.bf16.msrb.mxu2 %v3112_v52 }
 0x134   : > { %v632_v37 = vadd.f32 %v3611_v57, %v613_v23  ;;  %v736_v48 = vsel %vm689_vm3, %v3623_v4, %v733_v6  ;;  %v913_v63 = vpack.c.bf16 %v816_v55, %v4197_v36  ;;  %v851_v45 = vpack.c.bf16 %v754_v47, %v4181_v26  ;;  %2177 = vmatpush.bf16.msra.mxu1 %v3125_v51  ;;  %v3124_v36 = vld [vmem:[%s5047_s5 + $0x190] sm:$0xff] }
 0x135   : > { %v4329_v24 = vpack.c.bf16 %v4270_v14, %v4141_v62  ;;  %v848_v34 = vpack.c.bf16 %v754_v47, %v754_v47  ;;  %v820_v57 = vsel %vm692_vm2, %v4217_v18, %v798_v10  ;;  %v910_v23 = vpack.c.bf16 %v816_v55, %v816_v55 }
 0x136   : > { %v4334_v4 = vmax.f32 %v632_v37, 0.0  ;;  %v1244_v26 = vunpack.c.h.b16 %v4267_v42  ;;  %v1247_v6 = vunpack.c.h.b16 %v913_v63  ;;  %v1243_v62 = vunpack.c.l.b16 %v4267_v42 }
 0x137   : > { %v1246_v9 = vunpack.c.l.b16 %v913_v63  ;;  %v880_v47 = vpack.c.bf16 %v4270_v14, %v4270_v14  ;;  %v4343_v52 = vunpack.c.l.b16 %v908_v12  ;;  %v4345_v10 = vunpack.c.l.b16 %v910_v23 }
 0x138   : > { %v885_v55 = vpack.c.bf16 %v4334_v4, %v4217_v18  ;;  %v710_v37 = vrot.slane %v4334_v4, 7  ;;  %v4350_v51 = vpack.c.b16 %v1247_v6, %v1244_v26  ;;  %v775_v43 = vrot.slane %v4334_v4, 1  ;;  %2178 = vmatpush.bf16.msra.mxu1 %v3124_v36 }
 0x139   : > { %5132 = vst [vmem:[#allocation48_spill] sm:$0xff] %v4343_v52  ;;  %v1121_v56 = vunpack.c.l.b16 %v4329_v24  ;;  %v989_v42 = vunpack.c.l.b16 %v848_v34  ;;  %v4354_v63 = vpack.c.b16 %v1246_v9, %v1243_v62  ;;  %v993_v26 = vunpack.c.l.b16 %v851_v45  ;;  %v3123_v52 = vld [vmem:[%s5047_s5 + $0x188] sm:$0xff] }
 0x13a   : > { %5133 = vst [vmem:[#allocation49_spill] sm:$0xff] %v4345_v10  ;;  %v1124_v12 = vunpack.c.l.b16 %v885_v55  ;;  %v734_v23 = vsel %vm713_vm0, %v710_v37, %v3638_v19  ;;  %v715_v18 = vsel %vm713_vm0, %v709_v38, %v710_v37  ;;  %v994_v62 = vunpack.c.h.b16 %v851_v45 }
 0x13b   : > { %v737_v6 = vsel %vm689_vm3, %v3621_v3, %v734_v23  ;;  %v850_v34 = vpack.c.bf16 %v715_v18, %v715_v18  ;;  %v853_v9 = vpack.c.bf16 %v715_v18, %v4244_v25  ;;  %v780_v19 = vsel %vm778_vm1, %v774_v15, %v775_v43 }
 0x13c   : > { %v1148_v35 = vpack.c.b16 %v1124_v12, %v1121_v56  ;;  %v823_v14 = vpack.c.bf16 %v737_v6, %v736_v48  ;;  %v882_v38 = vpack.c.bf16 %v4334_v4, %v4334_v4  ;;  %v799_v3 = vsel %vm778_vm1, %v775_v43, %v3644_v22  ;;  %2179 = vmatpush.bf16.msra.mxu1 %v3123_v52 }
 0x13d   : > { %v992_v36 = vunpack.c.l.b16 %v850_v34  ;;  %v996_v10 = vunpack.c.l.b16 %v853_v9  ;;  %v997_v44 = vunpack.c.h.b16 %v853_v9  ;;  %v821_v48 = vsel %vm692_vm2, %v4334_v4, %v799_v3  ;;  %v3122_v34 = vld [vmem:[%s5047_s5 + $0x180] sm:$0xff] }
 0x13e   : > { %v951_v25 = vunpack.c.l.b16 %v823_v14  ;;  %v952_v56 = vunpack.c.h.b16 %v823_v14  ;;  %v4380_v45 = vunpack.c.l.b16 %v880_v47  ;;  %2069 = vmatmul.bf16.gmra.mxu0 %v1148_v35  ;;  %v915_v18 = vpack.c.bf16 %v780_v19, %v4262_v28  ;;  %v3111_v28 = vld [vmem:[%s5047_s5 + $0x128] sm:$0xff] }
 0x13f   : > { %v1019_v15 = vpack.c.b16 %v992_v36, %v989_v42  ;;  %v4382_v12 = vpack.c.b16 %v996_v10, %v993_v26  ;;  %v4384_v23 = vpack.c.b16 %v997_v44, %v994_v62  ;;  %v5134_v6 = vunpack.c.l.b16 %v3659_v30  ;;  %2077 = vmatpush.bf16.msrb.mxu2 %v3111_v28  ;;  %v5145_v28 = vld [vmem:[#allocation30_spill] sm:$0xff] }
 0x140   : > { %v5135_v14 = vunpack.c.h.b16 %v3659_v30  ;;  %v917_v47 = vpack.c.bf16 %v821_v48, %v820_v57  ;;  %v1122_v35 = vunpack.c.h.b16 %v4329_v24  ;;  %v1249_v42 = vunpack.c.l.b16 %v915_v18  ;;  %2180 = vmatpush.bf16.msra.mxu1 %v3122_v34 }
 0x141   : > { %v999_v22 = vpack.c.b16 %v5134_v6, %v951_v25  ;;  %v1250_v10 = vunpack.c.h.b16 %v915_v18  ;;  %v4395_v26 = vunpack.c.l.b16 %v882_v38  ;;  %v1125_v44 = vunpack.c.h.b16 %v885_v55  ;;  %v5184_v38 = vld [vmem:[#allocation47_spill] sm:$0xff] }
 0x142   : > { %v1000_v52 = vpack.c.b16 %v5135_v14, %v952_v56  ;;  %v1252_v30 = vunpack.c.l.b16 %v917_v47  ;;  %v1253_v9 = vunpack.c.h.b16 %v917_v47  ;;  %v5136_v62 = vrot.slane %v4201_v7, 1  ;;  %2015 = vmatmul.bf16.gmra.mxu1 %v1019_v15 }
 0x143   : > { %1887 = vmatmul.bf16.vlgmr.msra.gmra.mxu2 %v999_v22  ;;  %v912_v36 = vpack.c.bf16 %v780_v19, %v780_v19  ;;  %v5137_v24 = vrot.slane %v4201_v7, 7  ;;  %v4410_v3 = vpack.c.b16 %v1125_v44, %v1122_v35  ;;  %v3110_v35 = vld [vmem:[%s5047_s5 + $0x120] sm:$0xff] }
 0x144   : > { %1936 = vmatmul.bf16.vlgmr.msra.gmra.mxu3 %v1000_v52  ;;  %v784_v57 = vsel %vm778_vm1, %v775_v43, %v5136_v62  ;;  %v4415_v56 = vpack.c.b16 %v1252_v30, %v1249_v42  ;;  %v4417_v43 = vpack.c.b16 %v1253_v9, %v1250_v10  ;;  %3155 = vmatpush.bf16.msrb.mxu1 %v4012_v8  ;;  %v5143_v42 = vld [vmem:[#allocation41_spill] sm:$0xff]  ;;  %v5144_v10 = vld [vmem:[#allocation42_spill] sm:$0xff]  ;;  %v3106_v44 = vld [vmem:[%s5047_s5 + $0x100] sm:$0xff] }
 0x145   : > { %v719_v55 = vsel %vm713_vm0, %v710_v37, %v5137_v24  ;;  %v818_v25 = vsel %vm692_vm2, %v4334_v4, %v784_v57  ;;  %v4419_v48 = vunpack.c.l.b16 %v912_v36  ;;  %v5138_v37 = vrot.slane %v3711_v61, 7  ;;  %2078 = vmatpush.bf16.msrb.mxu2 %v3110_v35  ;;  %v3117_v30 = vld [vmem:[%s5047_s5 + $0x158] sm:$0xff]  ;;  %v3116_v62 = vld [vmem:[%s5047_s5 + $0x150] sm:$0xff]  ;;  %v3115_v36 = vld [vmem:[%s5047_s5 + $0x148] sm:$0xff] }
 0x146   : > { %v914_v19 = vpack.c.bf16 %v818_v25, %v818_v25  ;;  %v5139_v15 = vmov %v5137_v24  ;;  %v756_v4 = vsel %vm689_vm3, %v4201_v7, %v719_v55  ;;  %v5146_v24 = vld [vmem:[#allocation45_spill] sm:$0xff]  ;;  %v3114_v25 = vld [vmem:[%s5047_s5 + $0x140] sm:$0xff] }
 0x147   : > { %v716_v18 = vsel %vm713_vm0, %v5139_v15, %v5138_v37  ;;  %v852_v14 = vpack.c.bf16 %v756_v4, %v756_v4  ;;  %v3145_v37 = vld [vmem:[%s5047_s5 + $0x238] sm:$0xff] }
 0x148   : > { %v4431_v6 = vunpack.c.l.b16 %v914_v19  ;;  %v854_v52 = vpack.c.bf16 %v716_v18, %v716_v18  ;;  %3156 = vmatpush.bf16.msrb.mxu1 %v4037_v31  ;;  %v5141_v31 = vld [vmem:[#allocation24_spill] sm:$0xff]  ;;  %v5147_v19 = vld [vmem:[#allocation38_spill] sm:$0xff] }
 0x149   : > { %v995_v8 = vunpack.c.l.b16 %v852_v14  ;;  %v3144_v14 = vld [vmem:[%s5047_s5 + $0x230] sm:$0xff] }
 0x14a   : > { %v998_v34 = vunpack.c.l.b16 %v854_v52 }
 0x14c   : > { %3157 = vmatpush.bf16.msrb.mxu1 %v4086_v41  ;;  %v1022_v47 = vpack.c.b16 %v998_v34, %v995_v8  ;;  %v5150_v34 = vld [vmem:[#allocation13_spill] sm:$0xff] }
 0x14e   : > { %2230 = vmatmul.bf16.vlgmr.msra.gmra.mxu0 %v3719_v11 }
 0x150   : > { %3158 = vmatpush.bf16.msrb.mxu1 %v4112_v60  ;;  %v3119_v60 = vld [vmem:[%s5047_s5 + $0x168] sm:$0xff] }
 0x152   : > { %2020 = vmatmul.bf16.gmra.mxu1 %v1022_v47  ;;  %v5151_v47 = vld [vmem:[#allocation14_spill] sm:$0xff] }
 0x153   : > { %1892 = vmatmul.bf16.gmra.mxu2 %v3752_v27  ;;  %v3109_v27 = vld [vmem:[%s5047_s5 + $0x118] sm:$0xff]  ;;  %v5152_v35 = vpack.c.b16 %v5150_v34, %v5151_v47 }
 0x154   : > { %1941 = vmatmul.bf16.gmra.mxu3 %v3754_v46  ;;  %3159 = vmatpush.bf16.msrb.mxu1 %v4152_v49  ;;  %v5142_v49 = vld [vmem:[#allocation37_spill] sm:$0xff] }
 0x155   : > { %2079 = vmatpush.bf16.msrb.mxu2 %v3109_v27  ;;  %v3141_v27 = vld [vmem:[%s5047_s5 + $0x218] sm:$0xff] }
 0x158   : > { %3160 = vmatpush.bf16.msrb.mxu1 %v4176_v13 }
 0x15c   : > { %3161 = vmatpush.bf16.msrb.mxu1 %v4211_v58  ;;  %v3118_v58 = vld [vmem:[%s5047_s5 + $0x160] sm:$0xff] }
 0x15e   : > { %2235 = vmatmul.bf16.gmra.mxu0 %v3806_v39 }
 0x15f   : > { %v4448_v11 = vpop.f32.mrf.mxu1 }
 0x160   : > { %3162 = vmatpush.bf16.msrb.mxu1 %v4252_v2 }
 0x162   : > { %2181 = vmatmul.bf16.vlgmr.msra.gmra.mxu1 %v3722_v16  ;;  %v4470_v16 = vpop.f32.mrf.mxu0 }
 0x163   : > { %1897 = vmatmul.bf16.gmra.mxu2 %v3829_v33  ;;  %v3108_v33 = vld [vmem:[%s5047_s5 + $0x110] sm:$0xff] }
 0x164   : > { %1946 = vmatmul.bf16.gmra.mxu3 %v3831_v29  ;;  %2080 = vmatpush.bf16.msrb.mxu2 %v3108_v33 }
 0x165   : > { %2271 = vmatpush.bf16.msra.mxu1 %v3145_v37 }
 0x167   : > { %v4457_v46 = vpop.f32.mrf.mxu1 }
 0x169   : > { %2272 = vmatpush.bf16.msra.mxu1 %v3144_v14 }
 0x16a   : > { %v4484_v41 = vpop.f32.mrf.mxu0 }
 0x16e   : > { %2240 = vmatmul.bf16.gmra.mxu0 %v3876_v54 }
 0x16f   : > { %v4460_v39 = vpop.f32.mrf.mxu1 }
 0x172   : > { %2186 = vmatmul.bf16.gmra.mxu1 %v3809_v50  ;;  %v3121_v50 = vld [vmem:[%s5047_s5 + $0x178] sm:$0xff]  ;;  %v4500_v2 = vpop.f32.mrf.mxu0 }
 0x173   : > { %1902 = vmatmul.bf16.gmra.mxu2 %v3907_v59  ;;  %v5140_v59 = vld [vmem:[#allocation33_spill] sm:$0xff]  ;;  %2124 = vmatpush.bf16.msrb.mxu3 %v3121_v50 }
 0x174   : > { %1951 = vmatmul.bf16.gmra.mxu3 %v3909_v1  ;;  %v3107_v1 = vld [vmem:[%s5047_s5 + $0x108] sm:$0xff]  ;;  %v3140_v50 = vld [vmem:[%s5047_s5 + $0x210] sm:$0xff] }
 0x175   : > { %2081 = vmatpush.bf16.msrb.mxu2 %v3107_v1 }
 0x177   : > { %v4468_v29 = vpop.f32.mrf.mxu1 }
 0x179   : > { %2082 = vmatpush.bf16.msrb.mxu2 %v3106_v44  ;;  %v5156_v44 = vld [vmem:[#allocation19_spill] sm:$0xff] }
 0x17a   : > { %v4516_v57 = vpop.f32.mrf.mxu0 }
 0x17d   : > { %3163 = vmatpush.bf16.msra.mxu2 %v3145_v37 }
 0x17e   : > { %2245 = vmatmul.bf16.gmra.mxu0 %v3966_v17 }
 0x17f   : > { %v4473_v54 = vpop.f32.mrf.mxu1 }
 0x181   : > { %3164 = vmatpush.bf16.msra.mxu2 %v3144_v14 }
 0x182   : > { %2191 = vmatmul.bf16.gmra.mxu1 %v5141_v31  ;;  %v4533_v15 = vpop.f32.mrf.mxu0 }
 0x183   : > { %1907 = vmatmul.bf16.gmra.mxu2 %v4018_v20  ;;  %v3120_v20 = vld [vmem:[%s5047_s5 + $0x170] sm:$0xff] }
 0x184   : > { %1956 = vmatmul.bf16.gmra.mxu3 %v5140_v59 }
 0x185   : > { %2125 = vmatpush.bf16.msrb.mxu3 %v3120_v20 }
 0x187   : > { %v4486_v17 = vpop.f32.mrf.mxu1 }
 0x189   : > { %2126 = vmatpush.bf16.msrb.mxu3 %v3119_v60 }
 0x18a   : > { %v4537_v4 = vpop.f32.mrf.mxu0 }
 0x18d   : > { %2127 = vmatpush.bf16.msrb.mxu3 %v3118_v58 }
 0x18e   : > { %2250 = vmatmul.bf16.gmra.mxu0 %v5142_v49 }
 0x18f   : > { %v4495_v13 = vpop.f32.mrf.mxu1 }
 0x191   : > { %2128 = vmatpush.bf16.msrb.mxu3 %v3117_v30 }
 0x192   : > { %2196 = vmatmul.bf16.gmra.mxu1 %v5145_v28  ;;  %v5157_v28 = vld [vmem:[#allocation18_spill] sm:$0xff] }
 0x193   : > { %1912 = vmatmul.bf16.gmra.mxu2 %v5143_v42  ;;  %v3138_v42 = vld [vmem:[%s5047_s5 + $0x200] sm:$0xff]  ;;  %v5158_v30 = vpack.c.b16 %v5156_v44, %v5157_v28  ;;  %v5169_v44 = vld [vmem:[#allocation17_spill] sm:$0xff] }
 0x194   : > { %1961 = vmatmul.bf16.gmra.mxu3 %v5144_v10  ;;  %v5155_v10 = vld [vmem:[#allocation15_spill] sm:$0xff] }
 0x195   : > { %2129 = vmatpush.bf16.msrb.mxu3 %v3116_v62 }
 0x197   : > { %v4511_v9 = vpop.f32.mrf.mxu1 }
 0x199   : > { %2130 = vmatpush.bf16.msrb.mxu3 %v3115_v36 }
 0x19d   : > { %2131 = vmatpush.bf16.msrb.mxu3 %v3114_v25 }
 0x19e   : > { %2255 = vmatmul.bf16.gmra.mxu0 %v5146_v24 }
 0x19f   : > { %v4522_v55 = vpop.f32.mrf.mxu1 }
 0x1a2   : > { %2201 = vmatmul.bf16.gmra.mxu1 %v5147_v19 }
 0x1a3   : > { %1917 = vmatmul.bf16.gmra.mxu2 %v4280_v40 }
 0x1a4   : > { %1966 = vmatmul.bf16.gmra.mxu3 %v4282_v0  ;;  %v5148_v0 = vld [vmem:[#allocation46_spill] sm:$0xff] }
 0x1a7   : > { %v4535_v18 = vpop.f32.mrf.mxu1 }
 0x1ae   : > { %2260 = vmatmul.bf16.gmra.mxu0 %v4350_v51  ;;  %v3143_v51 = vld [vmem:[%s5047_s5 + $0x228] sm:$0xff] }
 0x1af   : > { %v4540_v40 = vpop.f32.mrf.mxu1  ;;  %2273 = vmatpush.bf16.msra.mxu1 %v3143_v51  ;;  %3165 = vmatpush.bf16.msra.mxu2 %v3143_v51  ;;  %v5160_v51 = vld [vmem:[#allocation20_spill] sm:$0xff] }
 0x1b2   : > { %2206 = vmatmul.bf16.gmra.mxu1 %v5148_v0 }
 0x1b3   : > { %1922 = vmatmul.bf16.gmra.mxu2 %v4382_v12  ;;  %v3142_v12 = vld [vmem:[%s5047_s5 + $0x220] sm:$0xff] }
 0x1b4   : > { %1971 = vmatmul.bf16.gmra.mxu3 %v4384_v23  ;;  %v5149_v23 = vld [vmem:[#allocation11_spill] sm:$0xff]  ;;  %3166 = vmatpush.bf16.msra.mxu2 %v3142_v12 }
 0x1b5   : > { %2274 = vmatpush.bf16.msra.mxu1 %v3142_v12  ;;  %v5161_v12 = vld [vmem:[#allocation25_spill] sm:$0xff] }
 0x1b7   : > { %v4548_v52 = vpop.f32.mrf.mxu1 }
 0x1b8   : > { %3167 = vmatpush.bf16.msra.mxu2 %v3141_v27 }
 0x1b9   : > { %2275 = vmatpush.bf16.msra.mxu1 %v3141_v27 }
 0x1bc   : > { %3168 = vmatpush.bf16.msra.mxu2 %v3140_v50 }
 0x1bd   : > { %2276 = vmatpush.bf16.msra.mxu1 %v3140_v50 }
 0x1bf   : > { %v4553_v8 = vpop.f32.mrf.mxu1 }
 0x1c2   : > { %2211 = vmatmul.bf16.gmra.mxu1 %v4354_v63  ;;  %v3139_v63 = vld [vmem:[%s5047_s5 + $0x208] sm:$0xff] }
 0x1c3   : > { %2083 = vmatmul.bf16.vlgmr.msrb.gmra.mxu2 %v5149_v23  ;;  %2277 = vmatpush.bf16.msra.mxu1 %v3139_v63  ;;  %v5162_v23 = vld [vmem:[#allocation23_spill] sm:$0xff] }
 0x1c4   : > { %2132 = vmatmul.bf16.vlgmr.msrb.gmra.mxu3 %v5152_v35  ;;  %3169 = vmatpush.bf16.msra.mxu2 %v3139_v63  ;;  %v5163_v34 = vpack.c.b16 %v5161_v12, %v5162_v23 }
 0x1c6   : > { %v1888_v33 = vpop.f32.mrf.mxu2 }
 0x1c7   : > { %v1937_v59 = vpop.f32.mrf.mxu3  ;;  %v4568_v31 = vpop.f32.mrf.mxu1  ;;  %2278 = vmatpush.bf16.msra.mxu1 %v3138_v42 }
 0x1c8   : > { %v4566_v1 = vadd.f32 %v1937_v59, %v1888_v33  ;;  %5153 = vst [vmem:[#allocation33_spill] sm:$0xff] %v4568_v31  ;;  %3170 = vmatpush.bf16.msra.mxu2 %v3138_v42  ;;  %v5167_v42 = vld [vmem:[#allocation28_spill] sm:$0xff] }
 0x1ce   : > { %v1890_v20 = vpop.f32.mrf.mxu2 }
 0x1cf   : > { %v1939_v60 = vpop.f32.mrf.mxu3  ;;  %v4578_v58 = vpop.f32.mrf.mxu1 }
 0x1d0   : > { %v4576_v49 = vadd.f32 %v1939_v60, %v1890_v20  ;;  %5154 = vst [vmem:[#allocation24_spill] sm:$0xff] %v4578_v58  ;;  %v5165_v20 = vld [vmem:[#allocation26_spill] sm:$0xff]  ;;  %v5166_v60 = vld [vmem:[#allocation31_spill] sm:$0xff] }
 0x1d1   : > { %v3150_v58 = vld [vmem:[%s5050_s8 + $0x20] sm:$0xff] }
 0x1d2   : > { %2216 = vmatmul.bf16.gmra.mxu1 %v4415_v56 }
 0x1d3   : > { %2088 = vmatmul.bf16.gmra.mxu2 %v5155_v10  ;;  %v5168_v10 = vpack.c.b16 %v5166_v60, %v5167_v42  ;;  %v4630_v42 = vpop.f32.mrf.mxu0 }
 0x1d4   : > { %2137 = vmatmul.bf16.gmra.mxu3 %v5158_v30 }
 0x1d6   : > { %v1893_v62 = vpop.f32.mrf.mxu2 }
 0x1d7   : > { %v1942_v36 = vpop.f32.mrf.mxu3  ;;  %v4590_v25 = vpop.f32.mrf.mxu1 }
 0x1d8   : > { %v4588_v24 = vadd.f32 %v1942_v36, %v1893_v62  ;;  %5159 = vst [vmem:[#allocation37_spill] sm:$0xff] %v4590_v25 }
 0x1de   : > { %v1895_v19 = vpop.f32.mrf.mxu2 }
 0x1df   : > { %v1944_v37 = vpop.f32.mrf.mxu3  ;;  %v4594_v14 = vpop.f32.mrf.mxu1 }
 0x1e0   : > { %v4592_v0 = vadd.f32 %v1944_v37, %v1895_v19 }
 0x1e2   : > { %2265 = vmatmul.bf16.vlgmr.msrb.gmra.mxu1 %v4417_v43  ;;  %v5170_v43 = vld [vmem:[#allocation16_spill] sm:$0xff] }
 0x1e3   : > { %2093 = vmatmul.bf16.gmra.mxu2 %v5160_v51  ;;  %v5171_v28 = vpack.c.b16 %v5169_v44, %v5170_v43 }
 0x1e4   : > { %2142 = vmatmul.bf16.gmra.mxu3 %v5163_v34  ;;  %v5174_v34 = vld [vmem:[#allocation32_spill] sm:$0xff] }
 0x1e6   : > { %v1898_v56 = vpop.f32.mrf.mxu2 }
 0x1e7   : > { %v1947_v47 = vpop.f32.mrf.mxu3  ;;  %v4603_v27 = vpop.f32.mrf.mxu1 }
 0x1e8   : > { %v4601_v35 = vadd.f32 %v1947_v47, %v1898_v56  ;;  %v5175_v56 = vld [vmem:[#allocation39_spill] sm:$0xff] }
 0x1e9   : > { %v5176_v47 = vld [vmem:[#allocation35_spill] sm:$0xff] }
 0x1ee   : > { %v1900_v33 = vpop.f32.mrf.mxu2 }
 0x1ef   : > { %v1949_v59 = vpop.f32.mrf.mxu3  ;;  %v4607_v63 = vpop.f32.mrf.mxu1 }
 0x1f0   : > { %v4605_v50 = vadd.f32 %v1949_v59, %v1900_v33  ;;  %5164 = vst [vmem:[#allocation41_spill] sm:$0xff] %v4607_v63  ;;  %v5177_v33 = vpack.c.b16 %v5175_v56, %v5176_v47 }
 0x1f2   : > { %2279 = vmatmul.bf16.vlgmr.msra.gmra.mxu1 %v5171_v28 }
 0x1f3   : > { %2098 = vmatmul.bf16.gmra.mxu2 %v5165_v20 }
 0x1f4   : > { %2147 = vmatmul.bf16.gmra.mxu3 %v5168_v10 }
 0x1f6   : > { %v1903_v30 = vpop.f32.mrf.mxu2 }
 0x1f7   : > { %v1952_v62 = vpop.f32.mrf.mxu3  ;;  %v4618_v19 = vpop.f32.mrf.mxu1 }
 0x1f8   : > { %v4616_v36 = vadd.f32 %v1952_v62, %v1903_v30  ;;  %5172 = vst [vmem:[#allocation42_spill] sm:$0xff] %v4618_v19  ;;  %v4640_v30 = vpop.f32.mrf.mxu0  ;;  %v5180_v62 = vld [vmem:[#allocation40_spill] sm:$0xff] }
 0x1fe   : > { %v1905_v37 = vpop.f32.mrf.mxu2 }
 0x1ff   : > { %v1954_v51 = vpop.f32.mrf.mxu3  ;;  %v4622_v23 = vpop.f32.mrf.mxu1 }
 0x200   : > { %v4620_v12 = vadd.f32 %v1954_v51, %v1905_v37  ;;  %5173 = vst [vmem:[#allocation30_spill] sm:$0xff] %v4622_v23  ;;  %v5181_v37 = vpack.c.b16 %v4274_v53, %v4272_v32  ;;  %v5185_v32 = vpack.c.b16 %v4395_v26, %v4380_v45 }
 0x203   : > { %2103 = vmatmul.bf16.gmra.mxu2 %v5174_v34 }
 0x204   : > { %2152 = vmatmul.bf16.gmra.mxu3 %v5177_v33  ;;  %v4650_v33 = vpop.f32.mrf.mxu0 }
 0x206   : > { %v1908_v59 = vpop.f32.mrf.mxu2 }
 0x207   : > { %v1957_v20 = vpop.f32.mrf.mxu3  ;;  %v4632_v10 = vpop.f32.mrf.mxu1 }
 0x208   : > { %v4628_v60 = vadd.f32 %v1957_v20, %v1908_v59  ;;  %5178 = vst [vmem:[#allocation45_spill] sm:$0xff] %v4632_v10 }
 0x20e   : > { %v4634_v44 = vpop.f32.mrf.mxu2 }
 0x20f   : > { %v4636_v43 = vpop.f32.mrf.mxu3  ;;  %v4638_v28 = vpop.f32.mrf.mxu1 }
 0x210   : > { %5179 = vst [vmem:[#allocation38_spill] sm:$0xff] %v4638_v28 }
 0x213   : > { %2108 = vmatmul.bf16.gmra.mxu2 %v5180_v62 }
 0x214   : > { %2157 = vmatmul.bf16.gmra.mxu3 %v5181_v37  ;;  %v4662_v37 = vpop.f32.mrf.mxu0 }
 0x216   : > { %v1913_v51 = vpop.f32.mrf.mxu2 }
 0x217   : > { %v1962_v34 = vpop.f32.mrf.mxu3  ;;  %v4648_v47 = vpop.f32.mrf.mxu1 }
 0x218   : > { %v4646_v56 = vadd.f32 %v1962_v34, %v1913_v51  ;;  %5182 = vst [vmem:[#allocation46_spill] sm:$0xff] %v4648_v47  ;;  %v884_v47 = vpack.c.bf16 %v4201_v7, %v4201_v7 }
 0x21a   : > { %v1123_v28 = vunpack.c.l.b16 %v884_v47 }
 0x21c   : > { %v4676_v26 = vpop.f32.mrf.mxu0 }
 0x21e   : > { %v4652_v59 = vpop.f32.mrf.mxu2 }
 0x21f   : > { %v4654_v20 = vpop.f32.mrf.mxu3  ;;  %v4656_v22 = vpop.f32.mrf.mxu1 }
 0x220   : > { %5183 = vst [vmem:[#allocation11_spill] sm:$0xff] %v4656_v22  ;;  %v886_v22 = vpack.c.bf16 %v3711_v61, %v3711_v61 }
 0x223   : > { %2113 = vmatmul.bf16.gmra.mxu2 %v5184_v38  ;;  %v1126_v38 = vunpack.c.l.b16 %v886_v22  ;;  %v3153_v22 = vld [vmem:[%s5050_s8 + $0x38] sm:$0xff] }
 0x224   : > { %2162 = vmatmul.bf16.gmra.mxu3 %v5185_v32  ;;  %v4685_v47 = vpop.f32.mrf.mxu0  ;;  %2448 = vmatpush.bf16.msrb.mxu1 %v3153_v22 }
 0x225   : > { %3171 = vmatpush.bf16.msra.mxu3 %v3153_v22  ;;  %v3151_v22 = vld [vmem:[%s5050_s8 + $0x28] sm:$0xff] }
 0x226   : > { %v1918_v53 = vpop.f32.mrf.mxu2 }
 0x227   : > { %v1967_v62 = vpop.f32.mrf.mxu3  ;;  %v4666_v34 = vpop.f32.mrf.mxu1 }
 0x228   : > { %v4664_v51 = vadd.f32 %v1967_v62, %v1918_v53  ;;  %5186 = vst [vmem:[#allocation13_spill] sm:$0xff] %v4666_v34  ;;  %v1150_v53 = vpack.c.b16 %v1126_v38, %v1123_v28  ;;  %v5193_v38 = vld [vmem:[#allocation21_spill] sm:$0xff] }
 0x22a   : > { %v2017_v5 = vadd.f32 %v4553_v8, %v4664_v51  ;;  %v5215_v51 = vld [vmem:[#allocation24_spill] sm:$0xff] }
 0x22e   : > { %v4672_v10 = vpop.f32.mrf.mxu2 }
 0x22f   : > { %v4674_v45 = vpop.f32.mrf.mxu3  ;;  %v4678_v32 = vpop.f32.mrf.mxu1 }
 0x230   : > { %5187 = vst [vmem:[#allocation14_spill] sm:$0xff] %v4678_v32  ;;  %v3152_v32 = vld [vmem:[%s5050_s8 + $0x30] sm:$0xff]  ;;  %v1970_v21 = vadd.f32 %v4674_v45, %v4672_v10 }
 0x231   : > { %2449 = vmatpush.bf16.msrb.mxu1 %v3152_v32  ;;  %3172 = vmatpush.bf16.msra.mxu3 %v3152_v32 }
 0x233   : > { %2118 = vmatmul.bf16.gmra.mxu2 %v4410_v3  ;;  %v5192_v3 = vld [vmem:[#allocation22_spill] sm:$0xff] }
 0x234   : > { %2167 = vmatmul.bf16.gmra.mxu3 %v1150_v53  ;;  %v5194_v53 = vpack.c.b16 %v5192_v3, %v5193_v38  ;;  %v1992_v3 = vadd.f32 %v4460_v39, %v4588_v24  ;;  %v3149_v39 = vld [vmem:[%s5050_s8 + $0x18] sm:$0xff] }
 0x235   : > { %2450 = vmatpush.bf16.msrb.mxu1 %v3151_v22  ;;  %3173 = vmatpush.bf16.msra.mxu3 %v3151_v22 }
 0x236   : > { %v1923_v62 = vpop.f32.mrf.mxu2  ;;  %v2041_v32 = vadd.f32 %v4500_v2, %v1992_v3 }
 0x237   : > { %v1972_v34 = vpop.f32.mrf.mxu3  ;;  %v4683_v19 = vpop.f32.mrf.mxu1 }
 0x238   : > { %v4681_v23 = vadd.f32 %v1972_v34, %v1923_v62  ;;  %5189 = vst [vmem:[#allocation19_spill] sm:$0xff] %v4683_v19  ;;  %v4697_v34 = vpop.f32.mrf.mxu0 }
 0x239   : > { %2451 = vmatpush.bf16.msrb.mxu1 %v3150_v58  ;;  %3174 = vmatpush.bf16.msra.mxu3 %v3150_v58  ;;  %v3148_v58 = vld [vmem:[%s5050_s8 + $0x10] sm:$0xff] }
 0x23a   : > { %5188 = vst [vmem:[#allocation15_spill] sm:$0xff] %v4681_v23 }
 0x23d   : > { %2452 = vmatpush.bf16.msrb.mxu1 %v3149_v39  ;;  %3175 = vmatpush.bf16.msra.mxu3 %v3149_v39  ;;  %v5201_v39 = vld [vmem:[#allocation36_spill] sm:$0xff] }
 0x23e   : > { %v4690_v63 = vpop.f32.mrf.mxu2 }
 0x23f   : > { %5190 = vst [vmem:[#allocation18_spill] sm:$0xff] %v4690_v63  ;;  %v4692_v28 = vpop.f32.mrf.mxu1  ;;  %v4731_v2 = vpop.f32.mrf.mxu3 }
 0x240   : > { %5191 = vst [vmem:[#allocation20_spill] sm:$0xff] %v4692_v28  ;;  %v4707_v25 = vpop.f32.mrf.mxu0 }
 0x241   : > { %2453 = vmatpush.bf16.msrb.mxu1 %v3148_v58  ;;  %3176 = vmatpush.bf16.msra.mxu3 %v3148_v58  ;;  %v5214_v8 = vld [vmem:[#allocation15_spill] sm:$0xff] }
 0x243   : > { %2284 = vmatmul.bf16.vlgmr.msra.gmra.mxu2 %v5194_v53  ;;  %v5196_v53 = vld [vmem:[#allocation29_spill] sm:$0xff] }
 0x246   : > { %v2084_v62 = vpop.f32.mrf.mxu2 }
 0x247   : > { %v4699_v19 = vpop.f32.mrf.mxu1 }
 0x248   : > { %5195 = vst [vmem:[#allocation25_spill] sm:$0xff] %v4699_v19  ;;  %v5197_v19 = vld [vmem:[#allocation27_spill] sm:$0xff]  ;;  %v4725_v24 = vpop.f32.mrf.mxu0 }
 0x249   : > { %v5198_v63 = vpack.c.b16 %v5196_v53, %v5197_v19  ;;  %v1987_v53 = vadd.f32 %v4448_v11, %v4566_v1  ;;  %v3146_v11 = vld [vmem:[%s5050_s8] sm:$0xff] }
 0x24e   : > { %v2086_v28 = vpop.f32.mrf.mxu2 }
 0x24f   : > { %v4711_v38 = vpop.f32.mrf.mxu1 }
 0x253   : > { %2289 = vmatmul.bf16.gmra.mxu2 %v5198_v63  ;;  %v1994_v63 = vadd.f32 %v4468_v29, %v4592_v0  ;;  %v1997_v29 = vadd.f32 %v4473_v54, %v4601_v35  ;;  %v2133_v54 = vpop.f32.mrf.mxu3  ;;  %v1989_v35 = vadd.f32 %v4457_v46, %v4576_v49 }
 0x255   : > { %v2046_v1 = vadd.f32 %v4533_v15, %v1997_v29 }
 0x256   : > { %v2089_v23 = vpop.f32.mrf.mxu2 }
 0x257   : > { %v4720_v31 = vadd.f32 %v2089_v23, %v2041_v32  ;;  %v4729_v19 = vpop.f32.mrf.mxu1  ;;  %v2043_v23 = vadd.f32 %v4516_v57, %v1994_v63  ;;  %v3147_v57 = vld [vmem:[%s5050_s8 + $0x8] sm:$0xff]  ;;  %v4748_v32 = vpop.f32.mrf.mxu0  ;;  %v5202_v63 = vld [vmem:[#allocation34_spill] sm:$0xff] }
 0x258   : > { %5199 = vst [vmem:[#allocation23_spill] sm:$0xff] %v4729_v19  ;;  %2454 = vmatpush.bf16.msrb.mxu1 %v3147_v57  ;;  %3177 = vmatpush.bf16.msra.mxu3 %v3147_v57  ;;  %v2038_v57 = vadd.f32 %v4484_v41, %v1989_v35 }
 0x25c   : > { %2455 = vmatpush.bf16.msrb.mxu1 %v3146_v11  ;;  %3178 = vmatpush.bf16.msra.mxu3 %v3146_v11  ;;  %v5204_v11 = vld [vmem:[#allocation44_spill] sm:$0xff] }
 0x25e   : > { %v2091_v22 = vpop.f32.mrf.mxu2 }
 0x25f   : > { %v4737_v3 = vadd.f32 %v2091_v22, %v2043_v23  ;;  %v4743_v0 = vpop.f32.mrf.mxu1  ;;  %v5203_v23 = vpack.c.b16 %v5201_v39, %v5202_v63  ;;  %v2036_v22 = vadd.f32 %v4470_v16, %v1987_v53  ;;  %v1999_v16 = vadd.f32 %v4486_v17, %v4605_v50 }
 0x260   : > { %5200 = vst [vmem:[#allocation26_spill] sm:$0xff] %v4743_v0  ;;  %v2087_v63 = vadd.f32 %v2086_v28, %v2038_v57 }
 0x261   : > { %v2085_v58 = vadd.f32 %v2084_v62, %v2036_v22  ;;  %v2048_v15 = vadd.f32 %v4537_v4, %v1999_v16  ;;  %v2135_v62 = vpop.f32.mrf.mxu3  ;;  %v2002_v22 = vadd.f32 %v4495_v13, %v4616_v36  ;;  %v4780_v4 = vld [vmem:[%s5048_s6] ss:$0 sm:$0xff] }
 0x262   : > { %v2136_v29 = vadd.f32 %v2135_v62, %v2087_v63  ;;  %v4789_v36 = vld [vmem:[%s5049_s7] ss:$0 sm:$0xff] }
 0x263   : > { %2294 = vmatmul.bf16.gmra.mxu2 %v5203_v23  ;;  %v2134_v39 = vadd.f32 %v2133_v54, %v2085_v58  ;;  %v2231_v23 = vpop.f32.mrf.mxu0  ;;  %v5205_v54 = vld [vmem:[#allocation43_spill] sm:$0xff] }
 0x264   : > { %v2185_v41 = vadd.f32 %v4603_v27, %v2136_v29 }
 0x265   : > { %v2183_v46 = vadd.f32 %v4594_v14, %v2134_v39  ;;  %v2051_v14 = vadd.f32 %v4630_v42, %v2002_v22  ;;  %v2004_v39 = vadd.f32 %v4511_v9, %v4620_v12  ;;  %v5207_v9 = vld [vmem:[#allocation49_spill] sm:$0xff]  ;;  %v5208_v12 = vld [vmem:[#allocation48_spill] sm:$0xff] }
 0x266   : > { %v2094_v19 = vpop.f32.mrf.mxu2 }
 0x267   : > { %v4760_v0 = vadd.f32 %v2094_v19, %v2046_v1  ;;  %v4764_v53 = vpop.f32.mrf.mxu1  ;;  %v2232_v50 = vadd.f32 %v2231_v23, %v2183_v46  ;;  %v5206_v1 = vpack.c.b16 %v5204_v11, %v5205_v54  ;;  %v5209_v11 = vpack.c.b16 %v5207_v9, %v5208_v12  ;;  %v5216_v12 = vld [vmem:[#allocation18_spill] sm:$0xff] }
 0x268   : > { %v1960_v54 = vadd.f32 %v4636_v43, %v4634_v44  ;;  %v5210_v44 = vpack.c.b16 %v4431_v6, %v4419_v48  ;;  %v5211_v43 = vld [vmem:[#allocation12_spill] sm:$0xff]  ;;  %v2022_v9 = vadd.f32 %v5215_v51, %v5214_v8  ;;  %v1975_v10 = vadd.f32 %v4731_v2, %v5216_v12 }
 0x26a   : > { %v2071_v45 = vadd.f32 %v4725_v24, %v2022_v9 }
 0x26b   : > { %v2233_v58 = vpop.f32.mrf.mxu0 }
 0x26c   : > { %v2234_v27 = vadd.f32 %v2233_v58, %v2185_v41  ;;  %v2012_v58 = vadd.f32 %v4540_v40, %v4646_v56 }
 0x26e   : > { %v2096_v49 = vpop.f32.mrf.mxu2 }
 0x26f   : > { %v4769_v19 = vadd.f32 %v2096_v49, %v2048_v15  ;;  %v2280_v17 = vpop.f32.mrf.mxu1  ;;  %v2053_v15 = vadd.f32 %v4640_v30, %v2004_v39 }
 0x270   : > { %v2281_v28 = vadd.f32 %v2280_v17, %v2232_v50  ;;  %v2007_v17 = vadd.f32 %v4522_v55, %v4628_v60  ;;  %v777_v60 = vrot.slane %v3711_v61, 1 }
 0x272   : > { %v2324_v13 = vmul.f32 %v4780_v4, %v2281_v28  ;;  %v2056_v30 = vadd.f32 %v4650_v33, %v2007_v17  ;;  %v2009_v28 = vadd.f32 %v4535_v18, %v1960_v54  ;;  %v800_v33 = vsel %vm778_vm1, %v777_v60, %v5211_v43  ;;  %v5218_v43 = vld [vmem:[#allocation41_spill] sm:$0xff] }
 0x273   : > { %2299 = vmatmul.bf16.gmra.mxu2 %v5206_v1  ;;  %v1965_v18 = vadd.f32 %v4654_v20, %v4652_v59  ;;  %v822_v48 = vsel %vm692_vm2, %v3711_v61, %v800_v33  ;;  %v2066_v61 = vadd.f32 %v4697_v34, %v2017_v5 }
 0x274   : > { %v2344_v23 = vadd.f32 %v4789_v36, %v2324_v13 }
 0x275   : > { %v2014_v40 = vadd.f32 %v4548_v52, %v1965_v18 }
 0x276   : > { %v2099_v35 = vpop.f32.mrf.mxu2  ;;  %v2360_v29 = vmax.f32 %v2344_v23, 0.0 }
 0x277   : > { %v4783_v16 = vadd.f32 %v2099_v35, %v2051_v14  ;;  %v2282_v57 = vpop.f32.mrf.mxu1  ;;  %v2058_v14 = vadd.f32 %v4662_v37, %v2009_v28  ;;  %v2061_v37 = vadd.f32 %v4676_v26, %v2012_v58  ;;  %v2063_v59 = vadd.f32 %v4685_v47, %v2014_v40  ;;  %v5213_v47 = vld [vmem:[#allocation33_spill] sm:$0xff] }
 0x278   : > { %v2283_v63 = vadd.f32 %v2282_v57, %v2234_v27  ;;  %v5212_v27 = vrot.slane %v4201_v7, 1  ;;  %v918_v57 = vpack.c.bf16 %v822_v48, %v822_v48 }
 0x27a   : > { %v2325_v42 = vmul.f32 %v4780_v4, %v2283_v63  ;;  %v781_v39 = vsel %vm778_vm1, %v5212_v27, %v777_v60  ;;  %v1254_v26 = vunpack.c.l.b16 %v918_v57 }
 0x27b   : > { %v916_v56 = vpack.c.bf16 %v781_v39, %v781_v39 }
 0x27c   : > { %v2345_v46 = vadd.f32 %v4789_v36, %v2325_v42  ;;  %v2138_v42 = vpop.f32.mrf.mxu3 }
 0x27d   : > { %v1251_v20 = vunpack.c.l.b16 %v916_v56 }
 0x27e   : > { %v2101_v49 = vpop.f32.mrf.mxu2  ;;  %v2361_v22 = vmax.f32 %v2345_v46, 0.0  ;;  %v2019_v46 = vadd.f32 %v5213_v47, %v1970_v21 }
 0x27f   : > { %v4797_v62 = vadd.f32 %v2101_v49, %v2053_v15  ;;  %v1278_v7 = vpack.c.b16 %v1254_v26, %v1251_v20  ;;  %v5220_v26 = vld [vmem:[#allocation30_spill] sm:$0xff] }
 0x280   : > { %v2376_v50 = vpack.c.bf16 %v2361_v22, %v2360_v29  ;;  %v2068_v29 = vadd.f32 %v4707_v25, %v2019_v46  ;;  %v2236_v22 = vpop.f32.mrf.mxu0 }
 0x282   : > { %2456 = vmatmul.bf16.vlgmr.msrb.gmra.mxu1 %v2376_v50 }
 0x283   : > { %2304 = vmatmul.bf16.gmra.mxu2 %v5209_v11 }
 0x284   : > { %v2140_v49 = vpop.f32.mrf.mxu3 }
 0x285   : > { %v2141_v24 = vadd.f32 %v2140_v49, %v4737_v3  ;;  %v5221_v49 = vld [vmem:[#allocation45_spill] sm:$0xff] }
 0x286   : > { %v2104_v1 = vpop.f32.mrf.mxu2 }
 0x287   : > { %v4807_v41 = vadd.f32 %v2104_v1, %v2056_v30  ;;  %v5217_v1 = vld [vmem:[#allocation37_spill] sm:$0xff] }
 0x288   : > { %v2238_v30 = vpop.f32.mrf.mxu0  ;;  %v2024_v28 = vadd.f32 %v5217_v1, %v1975_v10 }
 0x28a   : > { %v2073_v25 = vadd.f32 %v4748_v32, %v2024_v28 }
 0x28c   : > { %v2143_v34 = vpop.f32.mrf.mxu3 }
 0x28e   : > { %v2106_v35 = vpop.f32.mrf.mxu2 }
 0x28f   : > { %v4811_v55 = vadd.f32 %v2106_v35, %v2058_v14  ;;  %v2139_v35 = vadd.f32 %v2138_v42, %v4720_v31  ;;  %v2144_v31 = vadd.f32 %v2143_v34, %v4760_v0  ;;  %v5222_v34 = vld [vmem:[#allocation38_spill] sm:$0xff] }
 0x291   : > { %v2188_v2 = vadd.f32 %v5218_v43, %v2139_v35  ;;  %v2193_v3 = vadd.f32 %v5220_v26, %v2144_v31  ;;  %v5223_v43 = vld [vmem:[#allocation46_spill] sm:$0xff] }
 0x293   : > { %2309 = vmatmul.bf16.gmra.mxu2 %v5210_v44  ;;  %v2241_v44 = vpop.f32.mrf.mxu0  ;;  %v2237_v18 = vadd.f32 %v2236_v22, %v2188_v2 }
 0x294   : > { %v2145_v58 = vpop.f32.mrf.mxu3  ;;  %v2242_v46 = vadd.f32 %v2241_v44, %v2193_v3 }
 0x296   : > { %v2109_v13 = vpop.f32.mrf.mxu2 }
 0x297   : > { %v4832_v6 = vadd.f32 %v2109_v13, %v2061_v37  ;;  %v5219_v37 = vld [vmem:[#allocation42_spill] sm:$0xff] }
 0x298   : > { %v2190_v13 = vadd.f32 %v5219_v37, %v2141_v24 }
 0x29a   : > { %v2239_v40 = vadd.f32 %v2238_v30, %v2190_v13 }
 0x29b   : > { %v2243_v48 = vpop.f32.mrf.mxu0 }
 0x29c   : > { %v2148_v39 = vpop.f32.mrf.mxu3 }
 0x29d   : > { %v2149_v9 = vadd.f32 %v2148_v39, %v4783_v16 }
 0x29e   : > { %v2111_v63 = vpop.f32.mrf.mxu2 }
 0x29f   : > { %v4836_v23 = vadd.f32 %v2111_v63, %v2063_v59 }
 0x2a3   : > { %2314 = vmatmul.bf16.gmra.mxu2 %v1278_v7  ;;  %v2146_v7 = vadd.f32 %v2145_v58, %v4769_v19 }
 0x2a4   : > { %v2150_v5 = vpop.f32.mrf.mxu3 }
 0x2a5   : > { %v2195_v0 = vadd.f32 %v5221_v49, %v2146_v7  ;;  %v2151_v1 = vadd.f32 %v2150_v5, %v4797_v62 }
 0x2a6   : > { %v2114_v52 = vpop.f32.mrf.mxu2 }
 0x2a7   : > { %v4843_v15 = vadd.f32 %v2114_v52, %v2066_v61  ;;  %v2246_v61 = vpop.f32.mrf.mxu0  ;;  %v2200_v16 = vadd.f32 %v5223_v43, %v2151_v1 }
 0x2ac   : > { %v2153_v8 = vpop.f32.mrf.mxu3 }
 0x2ad   : > { %v2154_v13 = vadd.f32 %v2153_v8, %v4807_v41  ;;  %v5225_v41 = vld [vmem:[#allocation13_spill] sm:$0xff] }
 0x2ae   : > { %v2116_v17 = vpop.f32.mrf.mxu2 }
 0x2af   : > { %v4847_v50 = vadd.f32 %v2116_v17, %v2068_v29  ;;  %v2244_v17 = vadd.f32 %v2243_v48, %v2195_v0  ;;  %v2248_v10 = vpop.f32.mrf.mxu0  ;;  %v4898_v0 = vld [vmem:[%s5052_s10] ss:$0 sm:$0xff] }
 0x2b4   : > { %v2155_v44 = vpop.f32.mrf.mxu3 }
 0x2b6   : > { %v2119_v11 = vpop.f32.mrf.mxu2 }
 0x2b7   : > { %v4854_v54 = vadd.f32 %v2119_v11, %v2071_v45  ;;  %v2198_v11 = vadd.f32 %v5222_v34, %v2149_v9  ;;  %v2251_v24 = vpop.f32.mrf.mxu0 }
 0x2b9   : > { %v2247_v35 = vadd.f32 %v2246_v61, %v2198_v11  ;;  %v3258_v11 = vld [vmem:[%s3533_s20] sm:$0xff] }
 0x2bc   : > { %v2158_v48 = vpop.f32.mrf.mxu3 }
 0x2be   : > { %v2121_v14 = vpop.f32.mrf.mxu2 }
 0x2bf   : > { %v4859_v60 = vadd.f32 %v2121_v14, %v2073_v25  ;;  %v2253_v31 = vpop.f32.mrf.mxu0 }
 0x2c6   : > { %v2285_v33 = vpop.f32.mrf.mxu2 }
 0x2c7   : > { %v2286_v27 = vadd.f32 %v2285_v33, %v2237_v18  ;;  %v2249_v18 = vadd.f32 %v2248_v10, %v2200_v16 }
 0x2c9   : > { %v2326_v32 = vmul.f32 %v4780_v4, %v2286_v27 }
 0x2cb   : > { %v2346_v59 = vadd.f32 %v4789_v36, %v2326_v32  ;;  %v5224_v32 = vld [vmem:[#allocation11_spill] sm:$0xff] }
 0x2cd   : > { %v2362_v42 = vmax.f32 %v2346_v59, 0.0 }
 0x2ce   : > { %v2287_v56 = vpop.f32.mrf.mxu2 }
 0x2cf   : > { %v2288_v57 = vadd.f32 %v2287_v56, %v2239_v40  ;;  %v2203_v40 = vadd.f32 %v5224_v32, %v2154_v13 }
 0x2d1   : > { %v2327_v20 = vmul.f32 %v4780_v4, %v2288_v57  ;;  %v2156_v57 = vadd.f32 %v2155_v44, %v4811_v55  ;;  %v2252_v3 = vadd.f32 %v2251_v24, %v2203_v40  ;;  %v4892_v55 = vld [vmem:[%s5051_s9] ss:$0 sm:$0xff] }
 0x2d3   : > { %v2347_v63 = vadd.f32 %v4789_v36, %v2327_v20  ;;  %v2205_v5 = vadd.f32 %v5225_v41, %v2156_v57 }
 0x2d5   : > { %v2363_v21 = vmax.f32 %v2347_v63, 0.0  ;;  %v2254_v61 = vadd.f32 %v2253_v31, %v2205_v5  ;;  %v5228_v31 = vld [vmem:[#allocation20_spill] sm:$0xff]  ;;  %v5229_v5 = vld [vmem:[#allocation25_spill] sm:$0xff] }
 0x2d6   : > { %v2290_v52 = vpop.f32.mrf.mxu2 }
 0x2d7   : > { %v2377_v47 = vpack.c.bf16 %v2363_v21, %v2362_v42  ;;  %v2291_v29 = vadd.f32 %v2290_v52, %v2242_v46  ;;  %v2160_v42 = vpop.f32.mrf.mxu3  ;;  %v2256_v52 = vpop.f32.mrf.mxu0  ;;  %v2159_v46 = vadd.f32 %v2158_v48, %v4832_v6 }
 0x2d8   : > { %v2161_v10 = vadd.f32 %v2160_v42, %v4836_v23 }
 0x2d9   : > { %2461 = vmatmul.bf16.vlgmr.msra.gmra.mxu3 %v2377_v47  ;;  %v2328_v22 = vmul.f32 %v4780_v4, %v2291_v29 }
 0x2db   : > { %v2348_v19 = vadd.f32 %v4789_v36, %v2328_v22 }
 0x2dd   : > { %v2364_v28 = vmax.f32 %v2348_v19, 0.0 }
 0x2de   : > { %v2292_v51 = vpop.f32.mrf.mxu2 }
 0x2df   : > { %v2293_v12 = vadd.f32 %v2292_v51, %v2244_v17  ;;  %v5226_v51 = vld [vmem:[#allocation14_spill] sm:$0xff]  ;;  %v2163_v34 = vpop.f32.mrf.mxu3 }
 0x2e0   : > { %v2208_v9 = vadd.f32 %v5226_v51, %v2159_v46 }
 0x2e1   : > { %v2329_v45 = vmul.f32 %v4780_v4, %v2293_v12 }
 0x2e3   : > { %v2349_v30 = vadd.f32 %v4789_v36, %v2329_v45 }
 0x2e5   : > { %v2365_v25 = vmax.f32 %v2349_v30, 0.0 }
 0x2e6   : > { %v2295_v14 = vpop.f32.mrf.mxu2 }
 0x2e7   : > { %v2378_v58 = vpack.c.bf16 %v2365_v25, %v2364_v28  ;;  %v2296_v2 = vadd.f32 %v2295_v14, %v2247_v35  ;;  %v2257_v28 = vadd.f32 %v2256_v52, %v2208_v9  ;;  %v2258_v14 = vpop.f32.mrf.mxu0 }
 0x2e9   : > { %2466 = vmatmul.bf16.gmra.mxu3 %v2378_v58  ;;  %v2330_v33 = vmul.f32 %v4780_v4, %v2296_v2  ;;  %v5227_v58 = vld [vmem:[#allocation19_spill] sm:$0xff] }
 0x2ea   : > { %v2210_v44 = vadd.f32 %v5227_v58, %v2161_v10 }
 0x2eb   : > { %v2350_v62 = vadd.f32 %v4789_v36, %v2330_v33 }
 0x2ec   : > { %v2259_v33 = vadd.f32 %v2258_v14, %v2210_v44 }
 0x2ed   : > { %v2366_v59 = vmax.f32 %v2350_v62, 0.0 }
 0x2ee   : > { %v2297_v37 = vpop.f32.mrf.mxu2 }
 0x2ef   : > { %v2298_v27 = vadd.f32 %v2297_v37, %v2249_v18  ;;  %v3259_v18 = vld [vmem:[%s3533_s20 + $0x8] sm:$0xff] }
 0x2f1   : > { %v2331_v39 = vmul.f32 %v4780_v4, %v2298_v27  ;;  %v2164_v27 = vadd.f32 %v2163_v34, %v4843_v15 }
 0x2f3   : > { %v2351_v56 = vadd.f32 %v4789_v36, %v2331_v39  ;;  %v2165_v39 = vpop.f32.mrf.mxu3  ;;  %v2213_v57 = vadd.f32 %v5228_v31, %v2164_v27 }
 0x2f5   : > { %v2367_v20 = vmax.f32 %v2351_v56, 0.0  ;;  %v2261_v56 = vpop.f32.mrf.mxu0 }
 0x2f6   : > { %v2300_v26 = vpop.f32.mrf.mxu2  ;;  %v2262_v41 = vadd.f32 %v2261_v56, %v2213_v57 }
 0x2f7   : > { %v2379_v63 = vpack.c.bf16 %v2367_v20, %v2366_v59  ;;  %v2301_v7 = vadd.f32 %v2300_v26, %v2252_v3  ;;  %v2166_v20 = vadd.f32 %v2165_v39, %v4847_v50 }
 0x2f9   : > { %2471 = vmatmul.bf16.gmra.mxu3 %v2379_v63  ;;  %v2332_v21 = vmul.f32 %v4780_v4, %v2301_v7  ;;  %v2215_v7 = vadd.f32 %v5229_v5, %v2166_v20  ;;  %v3263_v20 = vld [vmem:[%s3533_s20 + $0x28] sm:$0xff]  ;;  %v3264_v5 = vld [vmem:[%s3533_s20 + $0x30] sm:$0xff] }
 0x2fb   : > { %v2352_v29 = vadd.f32 %v4789_v36, %v2332_v21  ;;  %v2168_v21 = vpop.f32.mrf.mxu3 }
 0x2fd   : > { %v2368_v19 = vmax.f32 %v2352_v29, 0.0 }
 0x2fe   : > { %v2302_v47 = vpop.f32.mrf.mxu2 }
 0x2ff   : > { %v2303_v49 = vadd.f32 %v2302_v47, %v2254_v61  ;;  %v2457_v17 = vpop.f32.mrf.mxu1  ;;  %v2263_v61 = vpop.f32.mrf.mxu0 }
 0x300   : > { %v2501_v8 = vmul.f32 %v4892_v55, %v2457_v17  ;;  %v2264_v47 = vadd.f32 %v2263_v61, %v2215_v7 }
 0x301   : > { %v2333_v22 = vmul.f32 %v4780_v4, %v2303_v49  ;;  %v2169_v49 = vadd.f32 %v2168_v21, %v4854_v54 }
 0x302   : > { %v2521_v6 = vadd.f32 %v4898_v0, %v2501_v8 }
 0x303   : > { %v2353_v12 = vadd.f32 %v4789_v36, %v2333_v22  ;;  %v2218_v17 = vadd.f32 %v4711_v38, %v2169_v49  ;;  %v2170_v51 = vpop.f32.mrf.mxu3 }
 0x304   : > { %v2537_v30 = vadd.f32 %v3258_v11, %v2521_v6  ;;  %v2171_v9 = vadd.f32 %v2170_v51, %v4859_v60  ;;  %v5231_v11 = vld [vmem:[#allocation23_spill] sm:$0xff] }
 0x305   : > { %v2369_v45 = vmax.f32 %v2353_v12, 0.0 }
 0x306   : > { %v2305_v1 = vpop.f32.mrf.mxu2  ;;  %v2553_v35 = vmax.f32 %v2537_v30, 0.0  ;;  %v2220_v54 = vadd.f32 %v5231_v11, %v2171_v9 }
 0x307   : > { %v2380_v25 = vpack.c.bf16 %v2369_v45, %v2368_v19  ;;  %v2306_v43 = vadd.f32 %v2305_v1, %v2257_v28  ;;  %v2459_v16 = vpop.f32.mrf.mxu1  ;;  %v5230_v19 = vld [vmem:[#allocation26_spill] sm:$0xff] }
 0x308   : > { %2569 = vst [vmem:[%s4912_s25] sm:$0xff] %v2553_v35  ;;  %v2502_v23 = vmul.f32 %v4892_v55, %v2459_v16  ;;  %v2267_v45 = vadd.f32 %v5230_v19, %v2218_v17  ;;  %v2269_v38 = vadd.f32 %v4764_v53, %v2220_v54  ;;  %v3266_v17 = vld [vmem:[%s3533_s20 + $0x40] sm:$0xff] }
 0x309   : > { %2476 = vmatmul.bf16.gmra.mxu3 %v2380_v25  ;;  %v2334_v24 = vmul.f32 %v4780_v4, %v2306_v43 }
 0x30a   : > { %v2522_v2 = vadd.f32 %v4898_v0, %v2502_v23 }
 0x30b   : > { %v2354_v32 = vadd.f32 %v4789_v36, %v2334_v24 }
 0x30c   : > { %v2538_v37 = vadd.f32 %v3259_v18, %v2522_v2  ;;  %v3260_v2 = vld [vmem:[%s3533_s20 + $0x10] sm:$0xff] }
 0x30d   : > { %v2370_v26 = vmax.f32 %v2354_v32, 0.0  ;;  %v3262_v32 = vld [vmem:[%s3533_s20 + $0x20] sm:$0xff] }
 0x30e   : > { %v2307_v13 = vpop.f32.mrf.mxu2  ;;  %v2554_v48 = vmax.f32 %v2538_v37, 0.0  ;;  %v3261_v37 = vld [vmem:[%s3533_s20 + $0x18] sm:$0xff] }
 0x30f   : > { %v2308_v62 = vadd.f32 %v2307_v13, %v2259_v33 }
 0x310   : > { %2570 = vst [vmem:[%s4912_s25 + $0x8] sm:$0xff] %v2554_v48 }
 0x311   : > { %v2335_v40 = vmul.f32 %v4780_v4, %v2308_v62 }
 0x313   : > { %v2355_v59 = vadd.f32 %v4789_v36, %v2335_v40 }
 0x315   : > { %v2371_v3 = vmax.f32 %v2355_v59, 0.0 }
 0x316   : > { %v2310_v63 = vpop.f32.mrf.mxu2 }
 0x317   : > { %v2381_v15 = vpack.c.bf16 %v2371_v3, %v2370_v26  ;;  %v2311_v42 = vadd.f32 %v2310_v63, %v2262_v41 }
 0x319   : > { %2481 = vmatmul.bf16.gmra.mxu3 %v2381_v15  ;;  %v2336_v52 = vmul.f32 %v4780_v4, %v2311_v42 }
 0x31b   : > { %v2356_v50 = vadd.f32 %v4789_v36, %v2336_v52 }
 0x31d   : > { %v2372_v12 = vmax.f32 %v2356_v50, 0.0 }
 0x31e   : > { %v2312_v46 = vpop.f32.mrf.mxu2 }
 0x31f   : > { %v2313_v29 = vadd.f32 %v2312_v46, %v2264_v47  ;;  %v3265_v47 = vld [vmem:[%s3533_s20 + $0x38] sm:$0xff] }
 0x321   : > { %v2337_v22 = vmul.f32 %v4780_v4, %v2313_v29 }
 0x323   : > { %v2357_v8 = vadd.f32 %v4789_v36, %v2337_v22 }
 0x325   : > { %v2373_v6 = vmax.f32 %v2357_v8, 0.0 }
 0x326   : > { %v2315_v10 = vpop.f32.mrf.mxu2 }
 0x327   : > { %v2382_v34 = vpack.c.bf16 %v2373_v6, %v2372_v12  ;;  %v2316_v30 = vadd.f32 %v2315_v10, %v2267_v45  ;;  %v3267_v10 = vld [vmem:[%s3533_s20 + $0x48] sm:$0xff] }
 0x329   : > { %2486 = vmatmul.bf16.gmra.mxu3 %v2382_v34  ;;  %v2338_v1 = vmul.f32 %v4780_v4, %v2316_v30  ;;  %v3268_v30 = vld [vmem:[%s3533_s20 + $0x50] sm:$0xff] }
 0x32b   : > { %v2358_v60 = vadd.f32 %v4789_v36, %v2338_v1 }
 0x32d   : > { %v2374_v58 = vmax.f32 %v2358_v60, 0.0 }
 0x32e   : > { %v2317_v28 = vpop.f32.mrf.mxu2 }
 0x32f   : > { %v2318_v25 = vadd.f32 %v2317_v28, %v2269_v38 }
 0x331   : > { %v2339_v14 = vmul.f32 %v4780_v4, %v2318_v25 }
 0x333   : > { %v2359_v35 = vadd.f32 %v4789_v36, %v2339_v14  ;;  %v3269_v14 = vld [vmem:[%s3533_s20 + $0x58] sm:$0xff] }
 0x335   : > { %v2375_v44 = vmax.f32 %v2359_v35, 0.0 }
 0x337   : > { %v2383_v43 = vpack.c.bf16 %v2375_v44, %v2374_v58 }
 0x339   : > { %2491 = vmatmul.bf16.gmra.mxu3 %v2383_v43 }
 0x35c   : > { %v2462_v16 = vpop.f32.mrf.mxu3 }
 0x35d   : > { %v2503_v23 = vmul.f32 %v4892_v55, %v2462_v16 }
 0x35f   : > { %v2523_v53 = vadd.f32 %v4898_v0, %v2503_v23  ;;  %v3270_v23 = vld [vmem:[%s3533_s20 + $0x60] sm:$0xff] }
 0x361   : > { %v2539_v24 = vadd.f32 %v3260_v2, %v2523_v53 }
 0x363   : > { %v2555_v33 = vmax.f32 %v2539_v24, 0.0 }
 0x364   : > { %v2464_v18 = vpop.f32.mrf.mxu3 }
 0x365   : > { %2571 = vst [vmem:[%s4912_s25 + $0x10] sm:$0xff] %v2555_v33  ;;  %v2504_v4 = vmul.f32 %v4892_v55, %v2464_v18 }
 0x367   : > { %v2524_v36 = vadd.f32 %v4898_v0, %v2504_v4  ;;  %v3271_v4 = vld [vmem:[%s3533_s20 + $0x68] sm:$0xff] }
 0x369   : > { %v2540_v13 = vadd.f32 %v3261_v37, %v2524_v36 }
 0x36b   : > { %v2556_v27 = vmax.f32 %v2540_v13, 0.0 }
 0x36c   : > { %v2467_v62 = vpop.f32.mrf.mxu3 }
 0x36d   : > { %2572 = vst [vmem:[%s4912_s25 + $0x18] sm:$0xff] %v2556_v27  ;;  %v2505_v39 = vmul.f32 %v4892_v55, %v2467_v62 }
 0x36f   : > { %v2525_v48 = vadd.f32 %v4898_v0, %v2505_v39  ;;  %v3272_v39 = vld [vmem:[%s3533_s20 + $0x70] sm:$0xff] }
 0x371   : > { %v2541_v40 = vadd.f32 %v3262_v32, %v2525_v48 }
 0x373   : > { %v2557_v56 = vmax.f32 %v2541_v40, 0.0 }
 0x374   : > { %v2469_v31 = vpop.f32.mrf.mxu3 }
 0x375   : > { %2573 = vst [vmem:[%s4912_s25 + $0x20] sm:$0xff] %v2557_v56  ;;  %v2506_v57 = vmul.f32 %v4892_v55, %v2469_v31 }
 0x377   : > { %v2526_v59 = vadd.f32 %v4898_v0, %v2506_v57  ;;  %v3273_v57 = vld [vmem:[%s3533_s20 + $0x78] sm:$0xff] }
 0x379   : > { %v2542_v26 = vadd.f32 %v3263_v20, %v2526_v59 }
 0x37b   : > { %v2558_v3 = vmax.f32 %v2542_v26, 0.0 }
 0x37c   : > { %v2472_v63 = vpop.f32.mrf.mxu3 }
 0x37d   : > { %2574 = vst [vmem:[%s4912_s25 + $0x28] sm:$0xff] %v2558_v3  ;;  %v2507_v41 = vmul.f32 %v4892_v55, %v2472_v63 }
 0x37f   : > { %v2527_v15 = vadd.f32 %v4898_v0, %v2507_v41 }
 0x381   : > { %v2543_v7 = vadd.f32 %v3264_v5, %v2527_v15 }
 0x383   : > { %v2559_v42 = vmax.f32 %v2543_v7, 0.0 }
 0x384   : > { %v2474_v21 = vpop.f32.mrf.mxu3 }
 0x385   : > { %2575 = vst [vmem:[%s4912_s25 + $0x30] sm:$0xff] %v2559_v42  ;;  %v2508_v61 = vmul.f32 %v4892_v55, %v2474_v21 }
 0x387   : > { %v2528_v52 = vadd.f32 %v4898_v0, %v2508_v61 }
 0x389   : > { %v2544_v46 = vadd.f32 %v3265_v47, %v2528_v52 }
 0x38b   : > { %v2560_v49 = vmax.f32 %v2544_v46, 0.0 }
 0x38c   : > { %v2477_v29 = vpop.f32.mrf.mxu3 }
 0x38d   : > { %2576 = vst [vmem:[%s4912_s25 + $0x38] sm:$0xff] %v2560_v49  ;;  %v2509_v50 = vmul.f32 %v4892_v55, %v2477_v29 }
 0x38f   : > { %v2529_v22 = vadd.f32 %v4898_v0, %v2509_v50 }
 0x391   : > { %v2545_v8 = vadd.f32 %v3266_v17, %v2529_v22 }
 0x393   : > { %v2561_v51 = vmax.f32 %v2545_v8, 0.0 }
 0x394   : > { %v2479_v9 = vpop.f32.mrf.mxu3 }
 0x395   : > { %2577 = vst [vmem:[%s4912_s25 + $0x40] sm:$0xff] %v2561_v51  ;;  %v2510_v12 = vmul.f32 %v4892_v55, %v2479_v9 }
 0x397   : > { %v2530_v6 = vadd.f32 %v4898_v0, %v2510_v12 }
 0x399   : > { %v2546_v19 = vadd.f32 %v3267_v10, %v2530_v6 }
 0x39b   : > { %v2562_v45 = vmax.f32 %v2546_v19, 0.0 }
 0x39c   : > { %v2482_v34 = vpop.f32.mrf.mxu3 }
 0x39d   : > { %2578 = vst [vmem:[%s4912_s25 + $0x48] sm:$0xff] %v2562_v45  ;;  %v2511_v11 = vmul.f32 %v4892_v55, %v2482_v34 }
 0x39f   : > { %v2531_v54 = vadd.f32 %v4898_v0, %v2511_v11 }
 0x3a1   : > { %v2547_v1 = vadd.f32 %v3268_v30, %v2531_v54 }
 0x3a3   : > { %v2563_v38 = vmax.f32 %v2547_v1, 0.0 }
 0x3a4   : > { %v2484_v28 = vpop.f32.mrf.mxu3 }
 0x3a5   : > { %2579 = vst [vmem:[%s4912_s25 + $0x50] sm:$0xff] %v2563_v38  ;;  %v2512_v25 = vmul.f32 %v4892_v55, %v2484_v28 }
 0x3a7   : > { %v2532_v60 = vadd.f32 %v4898_v0, %v2512_v25 }
 0x3a9   : > { %v2548_v35 = vadd.f32 %v3269_v14, %v2532_v60 }
 0x3ab   : > { %v2564_v58 = vmax.f32 %v2548_v35, 0.0 }
 0x3ac   : > { %v2487_v44 = vpop.f32.mrf.mxu3 }
 0x3ad   : > { %2580 = vst [vmem:[%s4912_s25 + $0x58] sm:$0xff] %v2564_v58  ;;  %v2513_v43 = vmul.f32 %v4892_v55, %v2487_v44 }
 0x3af   : > { %v2533_v16 = vadd.f32 %v4898_v0, %v2513_v43 }
 0x3b1   : > { %v2549_v53 = vadd.f32 %v3270_v23, %v2533_v16 }
 0x3b3   : > { %v2565_v2 = vmax.f32 %v2549_v53, 0.0 }
 0x3b4   : > { %v2489_v24 = vpop.f32.mrf.mxu3 }
 0x3b5   : > { %2581 = vst [vmem:[%s4912_s25 + $0x60] sm:$0xff] %v2565_v2  ;;  %v2514_v33 = vmul.f32 %v4892_v55, %v2489_v24 }
 0x3b7   : > { %v2534_v18 = vadd.f32 %v4898_v0, %v2514_v33 }
 0x3b9   : > { %v2550_v36 = vadd.f32 %v3271_v4, %v2534_v18 }
 0x3bb   : > { %v2566_v37 = vmax.f32 %v2550_v36, 0.0 }
 0x3bc   : > { %v2492_v13 = vpop.f32.mrf.mxu3 }
 0x3bd   : > { %2582 = vst [vmem:[%s4912_s25 + $0x68] sm:$0xff] %v2566_v37  ;;  %v2515_v27 = vmul.f32 %v4892_v55, %v2492_v13 }
 0x3bf   : > { %v2535_v62 = vadd.f32 %v4898_v0, %v2515_v27 }
 0x3c1   : > { %v2551_v48 = vadd.f32 %v3272_v39, %v2535_v62 }
 0x3c3   : > { %v2567_v32 = vmax.f32 %v2551_v48, 0.0 }
 0x3c4   : > { %v2494_v40 = vpop.f32.mrf.mxu3 }
 0x3c5   : > { %2583 = vst [vmem:[%s4912_s25 + $0x70] sm:$0xff] %v2567_v32  ;;  %v2516_v56 = vmul.f32 %v4892_v55, %v2494_v40 }
 0x3c7   : > { %v2536_v31 = vadd.f32 %v4898_v0, %v2516_v56 }
 0x3c9   : > { %v2552_v59 = vadd.f32 %v3273_v57, %v2536_v31 }
 0x3cb   : > { %v2568_v20 = vmax.f32 %v2552_v59, 0.0 }
 0x3cd   : > { %2584 = vst [vmem:[%s4912_s25 + $0x78] sm:$0xff] %v2568_v20 }
 0x3ce   : > { %3301 = shalt.err (!%p3298_p8)
}
 0x3cf   : > { %s3370_s20 = smov 128   ;;  %s3371_s30 = smov 8  }
 0x3d0   : > { %3179 = dma.vmem_to_hbm [thread:$0]  (%p3485_p5), %s2601_s26, 2048, %s2603_s22, %s2586_s27, %s3370_s20, %s3370_s20, %s3371_s30  }
 0x3d1 PF: > { %p3185_p9 = scmp.ge.s32.totalorder %s3368_s24, 2  ;;  %s2617_s16 = sand.u32 1, %s3340_s17  }
 0x3d2   : > { %s2618_s14 = scalar_lea.sflag [#allocation3], %s2617_s16 }
 0x3d3   : > { %p3182_p10 = pnand %p3185_p9, %p3491_p7 }
 0x3d5   : > { %p3183_p11 = pneg %p3182_p10 }
 0x3d7   : > { %3335 = dma.done.wait (%p3183_p11), %s2618_s14, 2048  }
 0x3d8   : > { %3337 = vsyncadd (%p3183_p11), %s2618_s14, 4294965248  ;;  %s24_s24 = sadd.s32 1, %s3368_s24   ;;  %s5233_s28 = sld [smem:[#allocation10_spill]] }
 0x3d9   : > { %p21_p12 = scmp.ge.s32.totalorder %s24_s24, 6   ;;  %s5234_s20 = sld [smem:[#allocation5_spill]] }
 0x3da   : > { %s5235_s21 = sld [smem:[#allocation6_spill]]  ;;  %s5238_s17 = smov %s3344_s18 }
 0x3db   : > { %s5236_s22 = sld [smem:[#allocation7_spill]]  ;;  %s5239_s18 = smov %s3348_s19 }
 0x3dc   : > { %s5237_s23 = sld [smem:[#allocation8_spill]]  ;;  %23 = sbr.rel (!%p21_p12) target bundleno = 5 (0x5), region = 102 }
 0x3de   : > { %s5240_s19 = smov %s5233_s28 }
 0x3e1   :  { %2624 = vsyncpa [#allocation3], 1 }
 0x3e2   :  { %2626 = vsyncpa [#allocation3 + $0x1], 1 }

</bundles_post_ra>
